<compile_context>
chip_gen: v5e
topology: v5e:2x2
jax: 0.10.0
libtpu: 0.0.40
codegen_flags: <defaults>
</compile_context>

<pallas_src>
import functools
import math

import jax
import jax.numpy as jnp
from jax.experimental import pallas as pl
from jax.experimental.pallas import tpu as pltpu


# -----------------------------------------------------------------------------------
# Fused decoder-layer kernel:
#   qi==0 sweep : K/V projection per kv tile -> persistent VMEM cache
#   ki==0       : Q projection + flash-state init (per q tile)
#   every step  : masked flash-attention update (skipped if the tile is fully masked)
#   ki==last    : normalize, output projection, optional fused final LayerNorm
# -----------------------------------------------------------------------------------
def _decoder_layer_kernel(flags_ref,
                          mask_ref, xq_ref, xkv_ref,
                          wq_ref, bq_ref, wkv_ref, bkv_ref, wo_ref, bo_ref,
                          g_ref, b2_ref,
                          out_ref,
                          k_scr, v_scr, q_scr, m_scr, l_scr, acc_scr,
                          *, num_heads, apply_norm, eps):
    h = num_heads
    TQ = xq_ref.shape[1]
    TK = xkv_ref.shape[1]
    D = xq_ref.shape[2]
    dk = D // h
    cd = wq_ref.dtype                      # MXU operand dtype (f32 default, bf16 fast path)
    scale = 1.0 / math.sqrt(dk)

    b = pl.program_id(0)
    qi = pl.program_id(1)
    ki = pl.program_id(2)
    nq = pl.num_programs(1)
    nk = pl.num_programs(2)

    # ---- K/V projection: exactly once per (batch, kv-tile), cached in VMEM scratch ----
    @pl.when(qi == 0)
    def _project_kv():
        xkv = xkv_ref[0].astype(cd)                               # (TK, D)
        # The h-replicated LHS is built once per (batch, kv tile) — amortized S/TQ x
        # vs. the previous per-(qi,ki) projection.  (A broadcast-free 'ke,ged->gkd'
        # form would need a rank-3-rhs/no-batch dot_general, which Mosaic may reject.)
        xkv_b = jnp.broadcast_to(xkv[None], (2 * h, TK, D))
        kv = jnp.einsum('gke,ged->gkd', xkv_b, wkv_ref[...],
                        preferred_element_type=jnp.float32) + bkv_ref[...]   # (2h, TK, dk)
        k_scr[ki] = kv[:h].astype(k_scr.dtype)                    # leading-axis split: free
        v_scr[ki] = kv[h:].astype(v_scr.dtype)

    # ---- once per (batch, q-tile): head-batched Q projection + flash-state init ----
    @pl.when(ki == 0)
    def _init_q():
        xq = xq_ref[0].astype(cd)                                 # (TQ, D)
        xq_b = jnp.broadcast_to(xq[None], (h, TQ, D))
        q = jnp.einsum('hqe,hed->hqd', xq_b, wq_ref[...],
                       preferred_element_type=jnp.float32) + bq_ref[...]
        q_scr[...] = (q * scale).astype(q_scr.dtype)              # (h, TQ, dk)
        m_scr[...] = jnp.full(m_scr.shape, -jnp.inf, m_scr.dtype)
        l_scr[...] = jnp.zeros(l_scr.shape, l_scr.dtype)
        acc_scr[...] = jnp.zeros(acc_scr.shape, acc_scr.dtype)

    # ---- kv step: skipped entirely when the whole (q-tile, kv-tile) block is masked ----
    tile_live = flags_ref[(b * nq + qi) * nk + ki]

    @pl.when(tile_live != 0)
    def _attend():
        k = k_scr[ki].astype(cd)                                  # (h, TK, dk), from cache
        v = v_scr[ki].astype(cd)
        s = jnp.einsum('hqd,hkd->hqk', q_scr[...], k,
                       preferred_element_type=jnp.float32)        # (h, TQ, TK)
        s = jnp.where(mask_ref[0][None] != 0, s, -1e9)            # implicit broadcast, int8 test
        m_prev = m_scr[...]
        m_new = jnp.maximum(m_prev, jnp.max(s, axis=-1, keepdims=True))
        alpha = jnp.exp(m_prev - m_new)
        p = jnp.exp(s - m_new)                                    # f32 softmax math
        l_scr[...] = alpha * l_scr[...] + jnp.sum(p, axis=-1, keepdims=True)
        acc_scr[...] = alpha * acc_scr[...] + jnp.einsum(
            'hqk,hkd->hqd', p.astype(cd), v, preferred_element_type=jnp.float32)
        m_scr[...] = m_new

    # ---- once per (batch, q-tile): normalize, output projection, optional LayerNorm ----
    @pl.when(ki == nk - 1)
    def _finalize():
        l = l_scr[...]
        l = jnp.where(l > 0.0, l, 1.0)          # q rows with no live kv tile -> 0 (no NaN)
        ctx = acc_scr[...] / l                  # (h, TQ, dk), exact division
        # Static per-head loop of 2-D matmuls; no (h, TQ, D) intermediate, no cross-head sum.
        y = jnp.zeros((TQ, D), jnp.float32)
        for hh in range(h):
            y = y + jnp.dot(ctx[hh].astype(cd), wo_ref[hh],
                            preferred_element_type=jnp.float32)
        y = y + bo_ref[...]
        if apply_norm:                          # final LayerNorm fused into the last layer
            mean = jnp.mean(y, axis=-1, keepdims=True)
            c = y - mean
            var = jnp.sum(c * c, axis=-1, keepdims=True) * (1.0 / (D - 1))  # unbiased std
            y = g_ref[...] * (c / (jnp.sqrt(var) + eps)) + b2_ref[...]
        out_ref[0] = y.astype(out_ref.dtype)


def pack_decoder_layer_params(raw_params, num_heads, compute_dtype=jnp.float32):
    """Host-side (once per layer): pre-transpose, head-split and fuse projection weights.
    nn.Linear convention: y = x @ W.T + b with W of shape (out, in).
    K|V is packed head-major along the LEADING axis: (2h, D, dk)."""
    wq, bq, wk, bk, wv, bv, wo, bo = raw_params
    D = wq.shape[0]
    dk = D // num_heads

    def split_heads(w):      # (out, in) -> (h, in, dk): per-head column block of W.T
        return w.T.reshape(D, num_heads, dk).transpose(1, 0, 2)

    wq_h = split_heads(wq).astype(compute_dtype)                                   # (h, D, dk)
    wkv_h = jnp.concatenate([split_heads(wk), split_heads(wv)],
                            axis=0).astype(compute_dtype)                          # (2h, D, dk)
    wo_h = wo.T.reshape(num_heads, dk, D).astype(compute_dtype)                    # (h, dk, D)
    bq_h = bq.reshape(num_heads, 1, dk).astype(jnp.float32)                        # (h, 1, dk)
    bkv_h = jnp.concatenate([bk.reshape(num_heads, 1, dk),
                             bv.reshape(num_heads, 1, dk)], axis=0).astype(jnp.float32)
    bo_2d = bo.reshape(1, D).astype(jnp.float32)
    return (wq_h, bq_h, wkv_h, bkv_h, wo_h, bo_2d)


def decoder_self_attention_layer(x, mask_i8, packed, num_heads, gamma, beta, *,
                                 apply_final_norm=False, eps=1e-6,
                                 q_tile=None, kv_tile=None):
    B, S, D = x.shape
    assert D % num_heads == 0
    dk = D // num_heads
    wq_h, bq_h, wkv_h, bkv_h, wo_h, bo_2d = packed
    cd = wq_h.dtype

    # 256-sized tiles amortize per-step overhead and fill the 256-wide MXU N dim on
    # v6e/v7x; override q_tile/kv_tile for very long S or tight v7x VMEM.
    TQ = q_tile if q_tile is not None else min(S, 256)
    TK = kv_tile if kv_tile is not None else min(S, 256)
    assert S % TQ == 0 and S % TK == 0
    nq, nk = S // TQ, S // TK

    # Per-(b, q-tile, kv-tile) "any unmasked entry" flags -> fully-masked tiles skipped
    # (~2x less attention work for causal masks).  Flat 1-D int32 (avoids SMEM padding).
    flags = (mask_i8.reshape(B, nq, TQ, nk, TK) != 0).any(axis=(2, 4))
    flags = flags.reshape(-1).astype(jnp.int32)

    out_dtype = jnp.float32 if apply_final_norm else cd   # bf16 inter-layer acts on fast path
    g2 = gamma.reshape(1, D).astype(jnp.float32)
    b2 = beta.reshape(1, D).astype(jnp.float32)

    # The K/V view of x is only read during the qi==0 sweep; pin its block index for
    # qi > 0 so the redundant (S/TQ)x HBM re-read is elided by the pipeline.
    def xkv_index(b, qi, ki, flags_ref):
        del flags_ref
        return (b, jnp.where(qi == 0, ki, 0), 0)

    # Rough VMEM footprint: K/V cache + flash scratch + double-buffered blocks + weights.
    itemsize = jnp.dtype(cd).itemsize
    est = (2 * S * D * itemsize                                   # K/V cache scratch
           + num_heads * TQ * (dk * (itemsize + 4) + 8)           # q / acc / m / l scratch
           + 2 * 4 * D * D * itemsize                             # projection weights (2 bufs)
           + 2 * ((TQ + TK) * D * 4 + TQ * TK + TQ * D * 4))      # x, mask, out blocks
    # >= 32 MiB (safe everywhere); cap 96 MiB.  For v7x (64 MiB VMEM) keep <= ~48 MiB by
    # shrinking tiles / using bf16 packing if `est` grows large.
    vmem_limit = int(min(96 * 2**20, max(32 * 2**20, 2 * est)))

    kernel = functools.partial(_decoder_layer_kernel, num_heads=num_heads,
                               apply_norm=apply_final_norm, eps=eps)

    return pl.pallas_call(
        kernel,
        out_shape=jax.ShapeDtypeStruct((B, S, D), out_dtype),
        grid_spec=pltpu.PrefetchScalarGridSpec(
            num_scalar_prefetch=1,
            grid=(B, nq, nk),
            in_specs=[
                pl.BlockSpec((1, TQ, TK), lambda b, qi, ki, f: (b, qi, ki)),           # int8 mask
                pl.BlockSpec((1, TQ, D), lambda b, qi, ki, f: (b, qi, 0)),             # x (query view)
                pl.BlockSpec((1, TK, D), xkv_index),                                   # x (k/v view)
                pl.BlockSpec((num_heads, D, dk), lambda b, qi, ki, f: (0, 0, 0)),      # Wq (head-split)
                pl.BlockSpec((num_heads, 1, dk), lambda b, qi, ki, f: (0, 0, 0)),      # bq
                pl.BlockSpec((2 * num_heads, D, dk), lambda b, qi, ki, f: (0, 0, 0)),  # [Wk;Wv] head-major
                pl.BlockSpec((2 * num_heads, 1, dk), lambda b, qi, ki, f: (0, 0, 0)),  # [bk;bv]
                pl.BlockSpec((num_heads, dk, D), lambda b, qi, ki, f: (0, 0, 0)),      # Wo (head-split)
                pl.BlockSpec((1, D), lambda b, qi, ki, f: (0, 0)),                     # bo
                pl.BlockSpec((1, D), lambda b, qi, ki, f: (0, 0)),                     # gamma (last layer)
                pl.BlockSpec((1, D), lambda b, qi, ki, f: (0, 0)),                     # beta  (last layer)
            ],
            out_specs=pl.BlockSpec((1, TQ, D), lambda b, qi, ki, f: (b, qi, 0)),
            scratch_shapes=[
                pltpu.VMEM((nk, num_heads, TK, dk), cd),        # K cache (whole sequence)
                pltpu.VMEM((nk, num_heads, TK, dk), cd),        # V cache (whole sequence)
                pltpu.VMEM((num_heads, TQ, dk), cd),            # scaled Q for this q tile
                pltpu.VMEM((num_heads, TQ, 1), jnp.float32),    # running max
                pltpu.VMEM((num_heads, TQ, 1), jnp.float32),    # running denominator
                pltpu.VMEM((num_heads, TQ, dk), jnp.float32),   # context accumulator
            ]),
        compiler_params=pltpu.CompilerParams(
            # K/V cache carried across qi -> qi/ki must be "arbitrary";
            # batch stays "parallel" (v7x megacore sharding over B).
            dimension_semantics=("parallel", "arbitrary", "arbitrary"),
            vmem_limit_bytes=vmem_limit),
    )(flags, mask_i8, x, x, wq_h, bq_h, wkv_h, bkv_h, wo_h, bo_2d, g2, b2)


# -----------------------------------------------------------------------------------
# Standalone LayerNorm (only used when there are no decoder layers; otherwise the final
# norm is fused into the last layer's epilogue).  Matches the PyTorch module:
# unbiased std, eps added to std.
# -----------------------------------------------------------------------------------
def _layernorm_kernel(x_ref, g_ref, b_ref, o_ref, *, eps):
    x = x_ref[0].astype(jnp.float32)                          # (TS, D)
    D = x.shape[-1]
    mean = jnp.mean(x, axis=-1, keepdims=True)
    c = x - mean
    var = jnp.sum(c * c, axis=-1, keepdims=True) * (1.0 / (D - 1))
    o_ref[0] = (g_ref[...] * (c / (jnp.sqrt(var) + eps)) + b_ref[...]).astype(o_ref.dtype)


def layer_norm(x, gamma, beta, *, eps=1e-6, seq_tile=None):
    B, S, D = x.shape
    TS = seq_tile if seq_tile is not None else min(S, 256)
    assert S % TS == 0
    g2 = gamma.reshape(1, D).astype(jnp.float32)
    b2 = beta.reshape(1, D).astype(jnp.float32)
    kernel = functools.partial(_layernorm_kernel, eps=eps)
    return pl.pallas_call(
        kernel,
        out_shape=jax.ShapeDtypeStruct((B, S, D), jnp.float32),
        grid_spec=pltpu.PrefetchScalarGridSpec(
            num_scalar_prefetch=0,
            grid=(B, S // TS),
            in_specs=[pl.BlockSpec((1, TS, D), lambda b, s: (b, s, 0)),
                      pl.BlockSpec((1, D), lambda b, s: (0, 0)),
                      pl.BlockSpec((1, D), lambda b, s: (0, 0))],
            out_specs=pl.BlockSpec((1, TS, D), lambda b, s: (b, s, 0))),
        compiler_params=pltpu.CompilerParams(
            dimension_semantics=("parallel", "parallel")),
    )(x, g2, b2)


# -----------------------------------------------------------------------------------
# Decoder.forward: x -> layer_1(x, mask) -> ... -> layer_N(x, mask) -> LayerNorm(x)
# (final LayerNorm fused into layer_N's kernel).
# -----------------------------------------------------------------------------------
def decoder_forward(x, attn_mask, packed_layers, gamma, beta, num_heads, *, eps=1e-6):
    mask_i8 = (attn_mask != 0).astype(jnp.int8)   # 4x fewer mask DMA bytes than f32
    n = len(packed_layers)
    if n == 0:
        return layer_norm(x, gamma, beta, eps=eps)
    for i, packed in enumerate(packed_layers):
        x = decoder_self_attention_layer(
            x, mask_i8, packed, num_heads, gamma, beta,
            apply_final_norm=(i == n - 1), eps=eps)
    return x


# ---------------- pure-JAX reference (mirrors the PyTorch forward, all f32) ----------------
def _reference_mha_self(x, mask, raw, h):
    wq, bq, wk, bk, wv, bv, wo, bo = raw
    B, S, D = x.shape
    dk = D // h

    def proj(t, w, b):
        return t @ w.T + b

    Q = proj(x, wq, bq).reshape(B, S, h, dk).transpose(0, 2, 1, 3)
    K = proj(x, wk, bk).reshape(B, S, h, dk).transpose(0, 2, 1, 3)
    V = proj(x, wv, bv).reshape(B, S, h, dk).transpose(0, 2, 1, 3)
    s = jnp.einsum('bhqd,bhkd->bhqk', Q, K) / math.sqrt(dk)
    s = jnp.where(mask[:, None] == 0, -1e9, s)        # mask.unsqueeze(1)
    p = jax.nn.softmax(s, axis=-1)
    ctx = jnp.einsum('bhqk,bhkd->bhqd', p, V)
    return ctx.transpose(0, 2, 1, 3).reshape(B, S, D) @ wo.T + bo


def _reference_layernorm(x, gamma, beta, eps=1e-6):
    mean = x.mean(-1, keepdims=True)
    var = jnp.sum((x - mean) ** 2, -1, keepdims=True) / (x.shape[-1] - 1)   # unbiased std
    return gamma * (x - mean) / (jnp.sqrt(var) + eps) + beta


def _reference_decoder(x, mask, raw_layers, gamma, beta, h):
    for raw in raw_layers:
        x = _reference_mha_self(x, mask, raw, h)
    return _reference_layernorm(x, gamma, beta)


def _linear_init(key, out_f, in_f):
    """nn.Linear default init: U(-1/sqrt(in), 1/sqrt(in)) for weight and bias."""
    kw, kb = jax.random.split(key)
    bound = 1.0 / math.sqrt(in_f)
    w = jax.random.uniform(kw, (out_f, in_f), jnp.float32, -bound, bound)
    b = jax.random.uniform(kb, (out_f,), jnp.float32, -bound, bound)
    return w, b


if __name__ == "__main__":
    B, S, D, H, N_LAYERS = 2, 8, 32, 4, 2

    key = jax.random.PRNGKey(0)
    k_x, k_layers = jax.random.split(key)
    x = jax.random.normal(k_x, (B, S, D), jnp.float32)
    # Causal attention mask (1 = attend, 0 = masked) as the Decoder's attn_mask.
    attn_mask = jnp.broadcast_to(jnp.tril(jnp.ones((S, S), jnp.float32))[None], (B, S, S))

    raw_layers = []
    for lk in jax.random.split(k_layers, N_LAYERS):
        ks = jax.random.split(lk, 4)
        wq, bq = _linear_init(ks[0], D, D)
        wk, bk = _linear_init(ks[1], D, D)
        wv, bv = _linear_init(ks[2], D, D)
        wo, bo = _linear_init(ks[3], D, D)
        raw_layers.append((wq, bq, wk, bk, wv, bv, wo, bo))
    gamma = jnp.ones((D,), jnp.float32)   # LayerNorm a_2
    beta = jnp.zeros((D,), jnp.float32)   # LayerNorm b_2

    ref = _reference_decoder(x, attn_mask, raw_layers, gamma, beta, H)

    # Default path: f32 MXU operands / f32 inter-layer activations.
    packed_f32 = [pack_decoder_layer_params(r, H, jnp.float32) for r in raw_layers]
    out = jax.block_until_ready(decoder_forward(x, attn_mask, packed_f32, gamma, beta, H))
    assert out.shape == (B, S, D)
    assert bool(jnp.all(jnp.isfinite(out)))
    max_diff = float(jnp.max(jnp.abs(out - ref)))
    assert jnp.allclose(out, ref, rtol=2e-2, atol=2e-2), f"f32 path mismatch: {max_diff}"

    # Fast path (all gens: v5e MXU is bf16-capable too): bf16 weights + bf16 inter-layer
    # activations, f32 accumulation / f32 softmax; final output stays f32.
    packed_bf16 = [pack_decoder_layer_params(r, H, jnp.bfloat16) for r in raw_layers]
    out_bf16 = jax.block_until_ready(decoder_forward(x, attn_mask, packed_bf16, gamma, beta, H))
    assert bool(jnp.all(jnp.isfinite(out_bf16)))
    assert float(jnp.max(jnp.abs(out_bf16 - ref))) < 0.25, "bf16 path drifted too far"

    print("KERNEL_OK")
</pallas_src>

<mosaic_0001>
module attributes {stable_mosaic.version = 11 : i64} {
  func.func @_decoder_layer_kernel(%arg0: i32, %arg1: i32, %arg2: i32, %arg3: memref<2xi32, #tpu.memory_space<smem>>, %arg4: memref<1x8x8xi8, #tpu.memory_space<vmem>>, %arg5: memref<1x8x32xf32, #tpu.memory_space<vmem>>, %arg6: memref<1x8x32xf32, #tpu.memory_space<vmem>>, %arg7: memref<4x32x8xf32, #tpu.memory_space<vmem>>, %arg8: memref<4x1x8xf32, #tpu.memory_space<vmem>>, %arg9: memref<8x32x8xf32, #tpu.memory_space<vmem>>, %arg10: memref<8x1x8xf32, #tpu.memory_space<vmem>>, %arg11: memref<4x8x32xf32, #tpu.memory_space<vmem>>, %arg12: memref<1x32xf32, #tpu.memory_space<vmem>>, %arg13: memref<1x32xf32, #tpu.memory_space<vmem>>, %arg14: memref<1x32xf32, #tpu.memory_space<vmem>>, %arg15: memref<1x8x32xf32, #tpu.memory_space<vmem>>, %arg16: memref<1x4x8x8xf32, #tpu.memory_space<vmem>>, %arg17: memref<1x4x8x8xf32, #tpu.memory_space<vmem>>, %arg18: memref<4x8x8xf32, #tpu.memory_space<vmem>>, %arg19: memref<4x8x1xf32, #tpu.memory_space<vmem>>, %arg20: memref<4x8x1xf32, #tpu.memory_space<vmem>>, %arg21: memref<4x8x8xf32, #tpu.memory_space<vmem>>) attributes {dimension_semantics = [#tpu.dimension_semantics<parallel>, #tpu.dimension_semantics<arbitrary>, #tpu.dimension_semantics<arbitrary>], iteration_bounds = array<i64: 2, 1, 1>, scalar_prefetch = 1 : i64, scratch_operands = 6 : i64, tpu.core_type = #tpu.core_type<tc>, window_params = [{transform_indices = @transform_0, window_bounds = array<i64: 1, 8, 8>}, {transform_indices = @transform_1, window_bounds = array<i64: 1, 8, 32>}, {transform_indices = @transform_2, window_bounds = array<i64: 1, 8, 32>}, {pipeline_mode = #tpu.pipeline_mode<synchronous>, transform_indices = @transform_3, window_bounds = array<i64: 4, 32, 8>}, {pipeline_mode = #tpu.pipeline_mode<synchronous>, transform_indices = @transform_4, window_bounds = array<i64: 4, 1, 8>}, {pipeline_mode = #tpu.pipeline_mode<synchronous>, transform_indices = @transform_5, window_bounds = array<i64: 8, 32, 8>}, {pipeline_mode = #tpu.pipeline_mode<synchronous>, transform_indices = @transform_6, window_bounds = array<i64: 8, 1, 8>}, {pipeline_mode = #tpu.pipeline_mode<synchronous>, transform_indices = @transform_7, window_bounds = array<i64: 4, 8, 32>}, {pipeline_mode = #tpu.pipeline_mode<synchronous>, transform_indices = @transform_8, window_bounds = array<i64: 1, 32>}, {pipeline_mode = #tpu.pipeline_mode<synchronous>, transform_indices = @transform_9, window_bounds = array<i64: 1, 32>}, {pipeline_mode = #tpu.pipeline_mode<synchronous>, transform_indices = @transform_10, window_bounds = array<i64: 1, 32>}, {transform_indices = @transform_11, window_bounds = array<i64: 1, 8, 32>}]} {
    %c0_i32 = arith.constant 0 : i32
    %0 = arith.cmpi eq, %arg1, %c0_i32 : i32
    %1 = arith.extui %0 : i1 to i32
    %c0_i32_0 = arith.constant 0 : i32
    %2 = arith.cmpi ne, %1, %c0_i32_0 : i32
    scf.if %2 {
      %c0 = arith.constant 0 : index
      %c0_8 = arith.constant 0 : index
      %c0_9 = arith.constant 0 : index
      %18 = vector.load %arg6[%c0, %c0_8, %c0_9] : memref<1x8x32xf32, #tpu.memory_space<vmem>>, vector<1x8x32xf32>
      %19 = vector.shape_cast %18 : vector<1x8x32xf32> to vector<8x32xf32>
      %20 = vector.shape_cast %19 : vector<8x32xf32> to vector<1x8x32xf32>
      %21 = vector.shape_cast %20 : vector<1x8x32xf32> to vector<1x8x32xf32>
      %22 = vector.broadcast %21 : vector<1x8x32xf32> to vector<8x8x32xf32>
      %c0_10 = arith.constant 0 : index
      %c0_11 = arith.constant 0 : index
      %c0_12 = arith.constant 0 : index
      %23 = vector.load %arg9[%c0_10, %c0_11, %c0_12] : memref<8x32x8xf32, #tpu.memory_space<vmem>>, vector<8x32x8xf32>
      "tpu.trace_start"() <{level = 10 : i32, message = "gke,ged->gkd"}> : () -> ()
      %cst = arith.constant dense<0.000000e+00> : vector<8x8x8xf32>
      %24 = tpu.matmul %22, %23, %cst {dimension_numbers = #tpu.dot_dimension_numbers<[2], [1], [1], [2], [0, 0, 0, 1, 1, 2], [0], [0]>} : vector<8x8x32xf32>, vector<8x32x8xf32>, vector<8x8x8xf32> -> vector<8x8x8xf32>
      "tpu.trace_stop"() : () -> ()
      %c0_13 = arith.constant 0 : index
      %c0_14 = arith.constant 0 : index
      %c0_15 = arith.constant 0 : index
      %25 = vector.load %arg10[%c0_13, %c0_14, %c0_15] : memref<8x1x8xf32, #tpu.memory_space<vmem>>, vector<8x1x8xf32>
      %26 = vector.broadcast %25 : vector<8x1x8xf32> to vector<8x8x8xf32>
      %27 = arith.addf %24, %26 : vector<8x8x8xf32>
      %28 = vector.extract_strided_slice %27 {offsets = [0, 0, 0], sizes = [4, 8, 8], strides = [1, 1, 1]} : vector<8x8x8xf32> to vector<4x8x8xf32>
      %29 = arith.index_cast %arg2 : i32 to index
      %c0_16 = arith.constant 0 : index
      %c0_17 = arith.constant 0 : index
      %c0_18 = arith.constant 0 : index
      %30 = vector.load %arg16[%29, %c0_16, %c0_17, %c0_18] : memref<1x4x8x8xf32, #tpu.memory_space<vmem>>, vector<1x4x8x8xf32>
      %31 = vector.shape_cast %30 : vector<1x4x8x8xf32> to vector<4x8x8xf32>
      %32 = vector.shape_cast %28 : vector<4x8x8xf32> to vector<1x4x8x8xf32>
      tpu.vector_store %arg16[%29, %c0_16, %c0_17, %c0_18], %32 {strides = array<i32>} : memref<1x4x8x8xf32, #tpu.memory_space<vmem>>, vector<1x4x8x8xf32>,
      %33 = vector.extract_strided_slice %27 {offsets = [4, 0, 0], sizes = [4, 8, 8], strides = [1, 1, 1]} : vector<8x8x8xf32> to vector<4x8x8xf32>
      %34 = arith.index_cast %arg2 : i32 to index
      %c0_19 = arith.constant 0 : index
      %c0_20 = arith.constant 0 : index
      %c0_21 = arith.constant 0 : index
      %35 = vector.load %arg17[%34, %c0_19, %c0_20, %c0_21] : memref<1x4x8x8xf32, #tpu.memory_space<vmem>>, vector<1x4x8x8xf32>
      %36 = vector.shape_cast %35 : vector<1x4x8x8xf32> to vector<4x8x8xf32>
      %37 = vector.shape_cast %33 : vector<4x8x8xf32> to vector<1x4x8x8xf32>
      tpu.vector_store %arg17[%34, %c0_19, %c0_20, %c0_21], %37 {strides = array<i32>} : memref<1x4x8x8xf32, #tpu.memory_space<vmem>>, vector<1x4x8x8xf32>,
    } else {
    }
    %c0_i32_1 = arith.constant 0 : i32
    %3 = arith.cmpi eq, %arg2, %c0_i32_1 : i32
    %4 = arith.extui %3 : i1 to i32
    %c0_i32_2 = arith.constant 0 : i32
    %5 = arith.cmpi ne, %4, %c0_i32_2 : i32
    scf.if %5 {
      %c0 = arith.constant 0 : index
      %c0_8 = arith.constant 0 : index
      %c0_9 = arith.constant 0 : index
      %18 = vector.load %arg5[%c0, %c0_8, %c0_9] : memref<1x8x32xf32, #tpu.memory_space<vmem>>, vector<1x8x32xf32>
      %19 = vector.shape_cast %18 : vector<1x8x32xf32> to vector<8x32xf32>
      %20 = vector.shape_cast %19 : vector<8x32xf32> to vector<1x8x32xf32>
      %21 = vector.shape_cast %20 : vector<1x8x32xf32> to vector<1x8x32xf32>
      %22 = vector.broadcast %21 : vector<1x8x32xf32> to vector<4x8x32xf32>
      %c0_10 = arith.constant 0 : index
      %c0_11 = arith.constant 0 : index
      %c0_12 = arith.constant 0 : index
      %23 = vector.load %arg7[%c0_10, %c0_11, %c0_12] : memref<4x32x8xf32, #tpu.memory_space<vmem>>, vector<4x32x8xf32>
      "tpu.trace_start"() <{level = 10 : i32, message = "hqe,hed->hqd"}> : () -> ()
      %cst = arith.constant dense<0.000000e+00> : vector<4x8x8xf32>
      %24 = tpu.matmul %22, %23, %cst {dimension_numbers = #tpu.dot_dimension_numbers<[2], [1], [1], [2], [0, 0, 0, 1, 1, 2], [0], [0]>} : vector<4x8x32xf32>, vector<4x32x8xf32>, vector<4x8x8xf32> -> vector<4x8x8xf32>
      "tpu.trace_stop"() : () -> ()
      %c0_13 = arith.constant 0 : index
      %c0_14 = arith.constant 0 : index
      %c0_15 = arith.constant 0 : index
      %25 = vector.load %arg8[%c0_13, %c0_14, %c0_15] : memref<4x1x8xf32, #tpu.memory_space<vmem>>, vector<4x1x8xf32>
      %26 = vector.broadcast %25 : vector<4x1x8xf32> to vector<4x8x8xf32>
      %27 = arith.addf %24, %26 : vector<4x8x8xf32>
      %cst_16 = arith.constant 0.353553385 : f32
      %28 = vector.broadcast %cst_16 : f32 to vector<4x8x8xf32>
      %29 = arith.mulf %27, %28 : vector<4x8x8xf32>
      %c0_17 = arith.constant 0 : index
      %c0_18 = arith.constant 0 : index
      %c0_19 = arith.constant 0 : index
      %30 = vector.load %arg18[%c0_17, %c0_18, %c0_19] : memref<4x8x8xf32, #tpu.memory_space<vmem>>, vector<4x8x8xf32>
      tpu.vector_store %arg18[%c0_17, %c0_18, %c0_19], %29 {strides = array<i32>} : memref<4x8x8xf32, #tpu.memory_space<vmem>>, vector<4x8x8xf32>,
      %cst_20 = arith.constant 0xFF800000 : f32
      %31 = vector.broadcast %cst_20 : f32 to vector<4x8x1xf32>
      %c0_21 = arith.constant 0 : index
      %c0_22 = arith.constant 0 : index
      %c0_23 = arith.constant 0 : index
      %32 = vector.load %arg19[%c0_21, %c0_22, %c0_23] : memref<4x8x1xf32, #tpu.memory_space<vmem>>, vector<4x8x1xf32>
      tpu.vector_store %arg19[%c0_21, %c0_22, %c0_23], %31 {strides = array<i32>} : memref<4x8x1xf32, #tpu.memory_space<vmem>>, vector<4x8x1xf32>,
      %cst_24 = arith.constant 0.000000e+00 : f32
      %33 = vector.broadcast %cst_24 : f32 to vector<4x8x1xf32>
      %c0_25 = arith.constant 0 : index
      %c0_26 = arith.constant 0 : index
      %c0_27 = arith.constant 0 : index
      %34 = vector.load %arg20[%c0_25, %c0_26, %c0_27] : memref<4x8x1xf32, #tpu.memory_space<vmem>>, vector<4x8x1xf32>
      tpu.vector_store %arg20[%c0_25, %c0_26, %c0_27], %33 {strides = array<i32>} : memref<4x8x1xf32, #tpu.memory_space<vmem>>, vector<4x8x1xf32>,
      %cst_28 = arith.constant 0.000000e+00 : f32
      %35 = vector.broadcast %cst_28 : f32 to vector<4x8x8xf32>
      %c0_29 = arith.constant 0 : index
      %c0_30 = arith.constant 0 : index
      %c0_31 = arith.constant 0 : index
      %36 = vector.load %arg21[%c0_29, %c0_30, %c0_31] : memref<4x8x8xf32, #tpu.memory_space<vmem>>, vector<4x8x8xf32>
      tpu.vector_store %arg21[%c0_29, %c0_30, %c0_31], %35 {strides = array<i32>} : memref<4x8x8xf32, #tpu.memory_space<vmem>>, vector<4x8x8xf32>,
    } else {
    }
    %c1_i32 = arith.constant 1 : i32
    %6 = arith.muli %arg0, %c1_i32 : i32
    %7 = arith.addi %6, %arg1 : i32
    %c1_i32_3 = arith.constant 1 : i32
    %8 = arith.muli %7, %c1_i32_3 : i32
    %9 = arith.addi %8, %arg2 : i32
    %10 = arith.index_cast %9 : i32 to index
    %11 = memref.load %arg3[%10] : memref<2xi32, #tpu.memory_space<smem>>
    %c0_i32_4 = arith.constant 0 : i32
    %12 = arith.cmpi ne, %11, %c0_i32_4 : i32
    %13 = arith.extui %12 : i1 to i32
    %c0_i32_5 = arith.constant 0 : i32
    %14 = arith.cmpi ne, %13, %c0_i32_5 : i32
    scf.if %14 {
      %18 = arith.index_cast %arg2 : i32 to index
      %c0 = arith.constant 0 : index
      %c0_8 = arith.constant 0 : index
      %c0_9 = arith.constant 0 : index
      %19 = vector.load %arg16[%18, %c0, %c0_8, %c0_9] : memref<1x4x8x8xf32, #tpu.memory_space<vmem>>, vector<1x4x8x8xf32>
      %20 = vector.shape_cast %19 : vector<1x4x8x8xf32> to vector<4x8x8xf32>
      %21 = arith.index_cast %arg2 : i32 to index
      %c0_10 = arith.constant 0 : index
      %c0_11 = arith.constant 0 : index
      %c0_12 = arith.constant 0 : index
      %22 = vector.load %arg17[%21, %c0_10, %c0_11, %c0_12] : memref<1x4x8x8xf32, #tpu.memory_space<vmem>>, vector<1x4x8x8xf32>
      %23 = vector.shape_cast %22 : vector<1x4x8x8xf32> to vector<4x8x8xf32>
      %c0_13 = arith.constant 0 : index
      %c0_14 = arith.constant 0 : index
      %c0_15 = arith.constant 0 : index
      %24 = vector.load %arg18[%c0_13, %c0_14, %c0_15] : memref<4x8x8xf32, #tpu.memory_space<vmem>>, vector<4x8x8xf32>
      "tpu.trace_start"() <{level = 10 : i32, message = "hqd,hkd->hqk"}> : () -> ()
      %cst = arith.constant dense<0.000000e+00> : vector<4x8x8xf32>
      %25 = tpu.matmul %24, %20, %cst {dimension_numbers = #tpu.dot_dimension_numbers<[2], [2], [1], [1], [0, 0, 0, 1, 1, 1], [0], [0]>} : vector<4x8x8xf32>, vector<4x8x8xf32>, vector<4x8x8xf32> -> vector<4x8x8xf32>
      "tpu.trace_stop"() : () -> ()
      %c0_16 = arith.constant 0 : index
      %c0_17 = arith.constant 0 : index
      %c0_18 = arith.constant 0 : index
      %26 = vector.load %arg4[%c0_16, %c0_17, %c0_18] : memref<1x8x8xi8, #tpu.memory_space<vmem>>, vector<1x8x8xi8>
      %27 = vector.shape_cast %26 : vector<1x8x8xi8> to vector<8x8xi8>
      %28 = vector.shape_cast %27 : vector<8x8xi8> to vector<1x8x8xi8>
      %c0_i8 = arith.constant 0 : i8
      %29 = vector.broadcast %c0_i8 : i8 to vector<1x8x8xi8>
      %30 = arith.cmpi ne, %28, %29 : vector<1x8x8xi8>
      %cst_19 = arith.constant -1.000000e+09 : f32
      %31 = vector.shape_cast %30 : vector<1x8x8xi1> to vector<1x8x8xi1>
      %32 = vector.broadcast %31 : vector<1x8x8xi1> to vector<4x8x8xi1>
      %33 = vector.broadcast %cst_19 : f32 to vector<4x8x8xf32>
      %34 = arith.select %32, %25, %33 : vector<4x8x8xi1>, vector<4x8x8xf32>
      %c0_20 = arith.constant 0 : index
      %c0_21 = arith.constant 0 : index
      %c0_22 = arith.constant 0 : index
      %35 = vector.load %arg19[%c0_20, %c0_21, %c0_22] : memref<4x8x1xf32, #tpu.memory_space<vmem>>, vector<4x8x1xf32>
      %cst_23 = arith.constant dense<0xFF800000> : vector<4x8xf32>
      %36 = vector.multi_reduction <maximumf>, %34, %cst_23 [2] : vector<4x8x8xf32> to vector<4x8xf32>
      %37 = vector.shape_cast %36 : vector<4x8xf32> to vector<4x8x1xf32>
      %38 = arith.maximumf %35, %37 : vector<4x8x1xf32>
      %39 = arith.subf %35, %38 : vector<4x8x1xf32>
      %40 = math.exp %39 : vector<4x8x1xf32>
      %41 = vector.broadcast %38 : vector<4x8x1xf32> to vector<4x8x8xf32>
      %42 = arith.subf %34, %41 : vector<4x8x8xf32>
      %43 = math.exp %42 : vector<4x8x8xf32>
      %c0_24 = arith.constant 0 : index
      %c0_25 = arith.constant 0 : index
      %c0_26 = arith.constant 0 : index
      %44 = vector.load %arg20[%c0_24, %c0_25, %c0_26] : memref<4x8x1xf32, #tpu.memory_space<vmem>>, vector<4x8x1xf32>
      %45 = arith.mulf %40, %44 : vector<4x8x1xf32>
      %cst_27 = arith.constant dense<0.000000e+00> : vector<4x8xf32>
      %46 = vector.multi_reduction <add>, %43, %cst_27 [2] : vector<4x8x8xf32> to vector<4x8xf32>
      %47 = vector.shape_cast %46 : vector<4x8xf32> to vector<4x8x1xf32>
      %48 = arith.addf %45, %47 : vector<4x8x1xf32>
      %c0_28 = arith.constant 0 : index
      %c0_29 = arith.constant 0 : index
      %c0_30 = arith.constant 0 : index
      %49 = vector.load %arg20[%c0_28, %c0_29, %c0_30] : memref<4x8x1xf32, #tpu.memory_space<vmem>>, vector<4x8x1xf32>
      tpu.vector_store %arg20[%c0_28, %c0_29, %c0_30], %48 {strides = array<i32>} : memref<4x8x1xf32, #tpu.memory_space<vmem>>, vector<4x8x1xf32>,
      %c0_31 = arith.constant 0 : index
      %c0_32 = arith.constant 0 : index
      %c0_33 = arith.constant 0 : index
      %50 = vector.load %arg21[%c0_31, %c0_32, %c0_33] : memref<4x8x8xf32, #tpu.memory_space<vmem>>, vector<4x8x8xf32>
      %51 = vector.broadcast %40 : vector<4x8x1xf32> to vector<4x8x8xf32>
      %52 = arith.mulf %51, %50 : vector<4x8x8xf32>
      "tpu.trace_start"() <{level = 10 : i32, message = "hqk,hkd->hqd"}> : () -> ()
      %cst_34 = arith.constant dense<0.000000e+00> : vector<4x8x8xf32>
      %53 = tpu.matmul %43, %23, %cst_34 {dimension_numbers = #tpu.dot_dimension_numbers<[2], [1], [1], [2], [0, 0, 0, 1, 1, 2], [0], [0]>} : vector<4x8x8xf32>, vector<4x8x8xf32>, vector<4x8x8xf32> -> vector<4x8x8xf32>
      "tpu.trace_stop"() : () -> ()
      %54 = arith.addf %52, %53 : vector<4x8x8xf32>
      %c0_35 = arith.constant 0 : index
      %c0_36 = arith.constant 0 : index
      %c0_37 = arith.constant 0 : index
      %55 = vector.load %arg21[%c0_35, %c0_36, %c0_37] : memref<4x8x8xf32, #tpu.memory_space<vmem>>, vector<4x8x8xf32>
      tpu.vector_store %arg21[%c0_35, %c0_36, %c0_37], %54 {strides = array<i32>} : memref<4x8x8xf32, #tpu.memory_space<vmem>>, vector<4x8x8xf32>,
      %c0_38 = arith.constant 0 : index
      %c0_39 = arith.constant 0 : index
      %c0_40 = arith.constant 0 : index
      %56 = vector.load %arg19[%c0_38, %c0_39, %c0_40] : memref<4x8x1xf32, #tpu.memory_space<vmem>>, vector<4x8x1xf32>
      tpu.vector_store %arg19[%c0_38, %c0_39, %c0_40], %38 {strides = array<i32>} : memref<4x8x1xf32, #tpu.memory_space<vmem>>, vector<4x8x1xf32>,
    } else {
    }
    %c0_i32_6 = arith.constant 0 : i32
    %15 = arith.cmpi eq, %arg2, %c0_i32_6 : i32
    %16 = arith.extui %15 : i1 to i32
    %c0_i32_7 = arith.constant 0 : i32
    %17 = arith.cmpi ne, %16, %c0_i32_7 : i32
    scf.if %17 {
      %c0 = arith.constant 0 : index
      %c0_8 = arith.constant 0 : index
      %c0_9 = arith.constant 0 : index
      %18 = vector.load %arg20[%c0, %c0_8, %c0_9] : memref<4x8x1xf32, #tpu.memory_space<vmem>>, vector<4x8x1xf32>
      %cst = arith.constant 0.000000e+00 : f32
      %19 = vector.broadcast %cst : f32 to vector<4x8x1xf32>
      %20 = arith.cmpf ogt, %18, %19 : vector<4x8x1xf32>
      %cst_10 = arith.constant 1.000000e+00 : f32
      %21 = vector.broadcast %cst_10 : f32 to vector<4x8x1xf32>
      %22 = arith.select %20, %18, %21 : vector<4x8x1xi1>, vector<4x8x1xf32>
      %c0_11 = arith.constant 0 : index
      %c0_12 = arith.constant 0 : index
      %c0_13 = arith.constant 0 : index
      %23 = vector.load %arg21[%c0_11, %c0_12, %c0_13] : memref<4x8x8xf32, #tpu.memory_space<vmem>>, vector<4x8x8xf32>
      %24 = vector.broadcast %22 : vector<4x8x1xf32> to vector<4x8x8xf32>
      %25 = arith.divf %23, %24 : vector<4x8x8xf32>
      %cst_14 = arith.constant 0.000000e+00 : f32
      %26 = vector.broadcast %cst_14 : f32 to vector<8x32xf32>
      %27 = vector.extract_strided_slice %25 {offsets = [0, 0, 0], sizes = [1, 8, 8], strides = [1, 1, 1]} : vector<4x8x8xf32> to vector<1x8x8xf32>
      %28 = vector.shape_cast %27 : vector<1x8x8xf32> to vector<8x8xf32>
      %c0_15 = arith.constant 0 : index
      %c0_16 = arith.constant 0 : index
      %c0_17 = arith.constant 0 : index
      %29 = vector.load %arg11[%c0_15, %c0_16, %c0_17] : memref<4x8x32xf32, #tpu.memory_space<vmem>>, vector<1x8x32xf32>
      %30 = vector.shape_cast %29 : vector<1x8x32xf32> to vector<8x32xf32>
      %cst_18 = arith.constant dense<0.000000e+00> : vector<8x32xf32>
      %31 = tpu.matmul %28, %30, %cst_18 {dimension_numbers = #tpu.dot_dimension_numbers<[1], [0], [0], [1], [0, 0, 1, 1], [], []>} : vector<8x8xf32>, vector<8x32xf32>, vector<8x32xf32> -> vector<8x32xf32>
      %32 = arith.addf %26, %31 : vector<8x32xf32>
      %33 = vector.extract_strided_slice %25 {offsets = [1, 0, 0], sizes = [1, 8, 8], strides = [1, 1, 1]} : vector<4x8x8xf32> to vector<1x8x8xf32>
      %34 = vector.shape_cast %33 : vector<1x8x8xf32> to vector<8x8xf32>
      %c1 = arith.constant 1 : index
      %c0_19 = arith.constant 0 : index
      %c0_20 = arith.constant 0 : index
      %35 = vector.load %arg11[%c1, %c0_19, %c0_20] : memref<4x8x32xf32, #tpu.memory_space<vmem>>, vector<1x8x32xf32>
      %36 = vector.shape_cast %35 : vector<1x8x32xf32> to vector<8x32xf32>
      %cst_21 = arith.constant dense<0.000000e+00> : vector<8x32xf32>
      %37 = tpu.matmul %34, %36, %cst_21 {dimension_numbers = #tpu.dot_dimension_numbers<[1], [0], [0], [1], [0, 0, 1, 1], [], []>} : vector<8x8xf32>, vector<8x32xf32>, vector<8x32xf32> -> vector<8x32xf32>
      %38 = arith.addf %32, %37 : vector<8x32xf32>
      %39 = vector.extract_strided_slice %25 {offsets = [2, 0, 0], sizes = [1, 8, 8], strides = [1, 1, 1]} : vector<4x8x8xf32> to vector<1x8x8xf32>
      %40 = vector.shape_cast %39 : vector<1x8x8xf32> to vector<8x8xf32>
      %c2 = arith.constant 2 : index
      %c0_22 = arith.constant 0 : index
      %c0_23 = arith.constant 0 : index
      %41 = vector.load %arg11[%c2, %c0_22, %c0_23] : memref<4x8x32xf32, #tpu.memory_space<vmem>>, vector<1x8x32xf32>
      %42 = vector.shape_cast %41 : vector<1x8x32xf32> to vector<8x32xf32>
      %cst_24 = arith.constant dense<0.000000e+00> : vector<8x32xf32>
      %43 = tpu.matmul %40, %42, %cst_24 {dimension_numbers = #tpu.dot_dimension_numbers<[1], [0], [0], [1], [0, 0, 1, 1], [], []>} : vector<8x8xf32>, vector<8x32xf32>, vector<8x32xf32> -> vector<8x32xf32>
      %44 = arith.addf %38, %43 : vector<8x32xf32>
      %45 = vector.extract_strided_slice %25 {offsets = [3, 0, 0], sizes = [1, 8, 8], strides = [1, 1, 1]} : vector<4x8x8xf32> to vector<1x8x8xf32>
      %46 = vector.shape_cast %45 : vector<1x8x8xf32> to vector<8x8xf32>
      %c3 = arith.constant 3 : index
      %c0_25 = arith.constant 0 : index
      %c0_26 = arith.constant 0 : index
      %47 = vector.load %arg11[%c3, %c0_25, %c0_26] : memref<4x8x32xf32, #tpu.memory_space<vmem>>, vector<1x8x32xf32>
      %48 = vector.shape_cast %47 : vector<1x8x32xf32> to vector<8x32xf32>
      %cst_27 = arith.constant dense<0.000000e+00> : vector<8x32xf32>
      %49 = tpu.matmul %46, %48, %cst_27 {dimension_numbers = #tpu.dot_dimension_numbers<[1], [0], [0], [1], [0, 0, 1, 1], [], []>} : vector<8x8xf32>, vector<8x32xf32>, vector<8x32xf32> -> vector<8x32xf32>
      %50 = arith.addf %44, %49 : vector<8x32xf32>
      %c0_28 = arith.constant 0 : index
      %c0_29 = arith.constant 0 : index
      %51 = vector.load %arg12[%c0_28, %c0_29] : memref<1x32xf32, #tpu.memory_space<vmem>>, vector<1x32xf32>
      %52 = vector.broadcast %51 : vector<1x32xf32> to vector<8x32xf32>
      %53 = arith.addf %50, %52 : vector<8x32xf32>
      %c0_30 = arith.constant 0 : index
      %c0_31 = arith.constant 0 : index
      %c0_32 = arith.constant 0 : index
      %54 = vector.load %arg15[%c0_30, %c0_31, %c0_32] : memref<1x8x32xf32, #tpu.memory_space<vmem>>, vector<1x8x32xf32>
      %55 = vector.shape_cast %54 : vector<1x8x32xf32> to vector<8x32xf32>
      %56 = vector.shape_cast %53 : vector<8x32xf32> to vector<1x8x32xf32>
      tpu.vector_store %arg15[%c0_30, %c0_31, %c0_32], %56 {strides = array<i32>} : memref<1x8x32xf32, #tpu.memory_space<vmem>>, vector<1x8x32xf32>,
    } else {
    }
    return
  }
  func.func @transform_0(%arg0: i32, %arg1: i32, %arg2: i32, %arg3: memref<2xi32, #tpu.memory_space<smem>>) -> (i32, i32, i32) {
    %c0_i32 = arith.constant 0 : i32
    return %arg0, %arg1, %arg2 : i32, i32, i32
  }
  func.func @transform_1(%arg0: i32, %arg1: i32, %arg2: i32, %arg3: memref<2xi32, #tpu.memory_space<smem>>) -> (i32, i32, i32) {
    %c0_i32 = arith.constant 0 : i32
    %c0_i32_0 = arith.constant 0 : i32
    return %arg0, %arg1, %c0_i32 : i32, i32, i32
  }
  func.func @transform_2(%arg0: i32, %arg1: i32, %arg2: i32, %arg3: memref<2xi32, #tpu.memory_space<smem>>) -> (i32, i32, i32) {
    %c0_i32 = arith.constant 0 : i32
    %0 = arith.cmpi eq, %arg1, %c0_i32 : i32
    %c0_i32_0 = arith.constant 0 : i32
    %1 = arith.select %0, %arg2, %c0_i32_0 : i32
    %c0_i32_1 = arith.constant 0 : i32
    %c0_i32_2 = arith.constant 0 : i32
    return %arg0, %1, %c0_i32_1 : i32, i32, i32
  }
  func.func @transform_3(%arg0: i32, %arg1: i32, %arg2: i32, %arg3: memref<2xi32, #tpu.memory_space<smem>>) -> (i32, i32, i32) {
    %c0_i32 = arith.constant 0 : i32
    %c0_i32_0 = arith.constant 0 : i32
    %c0_i32_1 = arith.constant 0 : i32
    %c0_i32_2 = arith.constant 0 : i32
    return %c0_i32, %c0_i32_0, %c0_i32_1 : i32, i32, i32
  }
  func.func @transform_4(%arg0: i32, %arg1: i32, %arg2: i32, %arg3: memref<2xi32, #tpu.memory_space<smem>>) -> (i32, i32, i32) {
    %c0_i32 = arith.constant 0 : i32
    %c0_i32_0 = arith.constant 0 : i32
    %c0_i32_1 = arith.constant 0 : i32
    %c0_i32_2 = arith.constant 0 : i32
    return %c0_i32, %c0_i32_0, %c0_i32_1 : i32, i32, i32
  }
  func.func @transform_5(%arg0: i32, %arg1: i32, %arg2: i32, %arg3: memref<2xi32, #tpu.memory_space<smem>>) -> (i32, i32, i32) {
    %c0_i32 = arith.constant 0 : i32
    %c0_i32_0 = arith.constant 0 : i32
    %c0_i32_1 = arith.constant 0 : i32
    %c0_i32_2 = arith.constant 0 : i32
    return %c0_i32, %c0_i32_0, %c0_i32_1 : i32, i32, i32
  }
  func.func @transform_6(%arg0: i32, %arg1: i32, %arg2: i32, %arg3: memref<2xi32, #tpu.memory_space<smem>>) -> (i32, i32, i32) {
    %c0_i32 = arith.constant 0 : i32
    %c0_i32_0 = arith.constant 0 : i32
    %c0_i32_1 = arith.constant 0 : i32
    %c0_i32_2 = arith.constant 0 : i32
    return %c0_i32, %c0_i32_0, %c0_i32_1 : i32, i32, i32
  }
  func.func @transform_7(%arg0: i32, %arg1: i32, %arg2: i32, %arg3: memref<2xi32, #tpu.memory_space<smem>>) -> (i32, i32, i32) {
    %c0_i32 = arith.constant 0 : i32
    %c0_i32_0 = arith.constant 0 : i32
    %c0_i32_1 = arith.constant 0 : i32
    %c0_i32_2 = arith.constant 0 : i32
    return %c0_i32, %c0_i32_0, %c0_i32_1 : i32, i32, i32
  }
  func.func @transform_8(%arg0: i32, %arg1: i32, %arg2: i32, %arg3: memref<2xi32, #tpu.memory_space<smem>>) -> (i32, i32) {
    %c0_i32 = arith.constant 0 : i32
    %c0_i32_0 = arith.constant 0 : i32
    %c0_i32_1 = arith.constant 0 : i32
    return %c0_i32, %c0_i32_0 : i32, i32
  }
  func.func @transform_9(%arg0: i32, %arg1: i32, %arg2: i32, %arg3: memref<2xi32, #tpu.memory_space<smem>>) -> (i32, i32) {
    %c0_i32 = arith.constant 0 : i32
    %c0_i32_0 = arith.constant 0 : i32
    %c0_i32_1 = arith.constant 0 : i32
    return %c0_i32, %c0_i32_0 : i32, i32
  }
  func.func @transform_10(%arg0: i32, %arg1: i32, %arg2: i32, %arg3: memref<2xi32, #tpu.memory_space<smem>>) -> (i32, i32) {
    %c0_i32 = arith.constant 0 : i32
    %c0_i32_0 = arith.constant 0 : i32
    %c0_i32_1 = arith.constant 0 : i32
    return %c0_i32, %c0_i32_0 : i32, i32
  }
  func.func @transform_11(%arg0: i32, %arg1: i32, %arg2: i32, %arg3: memref<2xi32, #tpu.memory_space<smem>>) -> (i32, i32, i32) {
    %c0_i32 = arith.constant 0 : i32
    %c0_i32_0 = arith.constant 0 : i32
    return %arg0, %arg1, %c0_i32 : i32, i32, i32
  }
}

</mosaic_0001>

<bundles_post_ra>
// kernel: tpu_custom_call.1
= control target key start
LH: loop header
LB: loop body
LE: loop exit
PB: predicated region body
PF: predicated region fallthrough
CT: control target
= control target key end

     0   :  { %s1838_s24 = smov [#allocation9]   ;;  %s2334_s0 = inlined_call_operand.vmem [shape: s32[2], index: 0, kind: input, shape index: {}]   ;;  %s2335_s1 = inlined_call_operand.vmem [shape: s8[2,8,8], index: 1, kind: input, shape index: {}]   ;;  %s2336_s2 = inlined_call_operand.vmem [shape: f32[2,8,32], index: 2, kind: input, shape index: {}]   ;;  %s2337_s3 = inlined_call_operand.vmem [shape: f32[2,8,32], index: 3, kind: input, shape index: {}]   ;;  %s2338_s4 = inlined_call_operand.vmem [shape: f32[4,32,8], index: 4, kind: input, shape index: {}]   ;;  %s2339_s5 = inlined_call_operand.vmem [shape: f32[4,1,8], index: 5, kind: input, shape index: {}]   ;;  %s2340_s6 = inlined_call_operand.vmem [shape: f32[8,32,8], index: 6, kind: input, shape index: {}]   ;;  %s2341_s7 = inlined_call_operand.vmem [shape: f32[8,1,8], index: 7, kind: input, shape index: {}]   ;;  %s2342_s8 = inlined_call_operand.vmem [shape: f32[4,8,32], index: 8, kind: input, shape index: {}]   ;;  %s2343_s9 = inlined_call_operand.vmem [shape: f32[1,32], index: 9, kind: input, shape index: {}]   ;;  %s2344_s10 = inlined_call_operand.vmem [shape: f32[1,32], index: 10, kind: input, shape index: {}]   ;;  %s2345_s11 = inlined_call_operand.vmem [shape: f32[1,32], index: 11, kind: input, shape index: {}]   ;;  %s2346_s12 = inlined_call_operand.hbm [shape: f32[2,8,32], index: 12, kind: output, shape index: {}]  }
   0x1   :  { %2350 = sst [smem:[#allocation17_spill]] %s2335_s1  ;;  %s18_s23 = sshll.u32 %s2334_s0, 4  ;;  %s19_s23 = int_to_ptr.vmem [resolvable:$true] %s18_s23 }
   0x2   :  { %21 = dma.vmem_to_smem %s19_s23, 16, %s1838_s24, [#allocation8] }
   0x3   :  { %1808 = dma.done.wait [#allocation8], 16 }
   0x4   :  { %1809 = vsyncadd [#allocation8], 4294967280 }
   0x5   :  { %24 = sfence }
   0x6   :  { %25 = vsyncpa [#allocation11], 0 }
   0x7   :  { %27 = vsyncpa [#allocation11 + $0x1], 0  ;;  %s1911_s25 = smov 0   ;;  %s1913_s10 = smov 0  }
   0x8   :  { %s1915_s11 = smov 0   ;;  %s1917_s26 = smov 0  }
   0x9   :  { %s1919_s27 = smov 0   ;;  %s1921_s28 = smov 0  }
   0xa LB: > { %2351 = sst [smem:[#allocation14_spill]] %s1832_s27  ;;  %s1597_s0 = sadd.s32 4294967295, %s1836_s28   ;;  %s1836_s28 = sphi %s1921_s28, %s33_s28   ;;  %s1832_s27 = sphi %s1919_s27, %s2360_s27   ;;  %s1828_s26 = sphi %s1917_s26, %s2359_s26   ;;  %s1824_s11 = sphi %s1915_s11, %s2363_s11   ;;  %s1820_s10 = sphi %s1913_s10, %s2362_s10   ;;  %s1816_s25 = sphi %s1911_s25, %s2361_s25  }
   0xb   : > { %s1598_s29 = sadd.s32 4294967294, %s1836_s28   ;;  %s52_s30 = sadd.s32 1, %s1832_s27 }
   0xc   : > { %s319_s13 = sadd.s32 1, %s1824_s11  ;;  %p54_p0 = scmp.ge.s32.totalorder %s52_s30, 2 }
   0xd   : > { %p329_p1 = scmp.ne.s32.totalorder %s1824_s11, %s1820_s10  ;;  %p330_p2 = scmp.eq.s32.totalorder %s1597_s0, 1 }
   0xe   : > { %p335_p3 = scmp.ne.s32.totalorder %s1820_s10, %s1816_s25  ;;  %s2365_s30 = smov (%p54_p0, %s52_s30), 0 }
   0xf   : > { %2352 = sst [smem:[#allocation15_spill]] %s2365_s30  ;;  %p1951_p4 = por %p330_p2, %p329_p1 }
  0x10   : > { %p336_p5 = scmp.eq.s32.totalorder %s1598_s29, 1  ;;  %s314_s15 = ssub.s32 %s1832_s27, %s2365_s30 }
  0x11   : > { %p1601_p6 = scmp.ge.s32.totalorder %s1836_s28, 1  ;;  %p317_p7 = scmp.eq.s32.totalorder %s314_s15, 0 }
  0x12   : > { %p1958_p8 = por %p336_p5, %p335_p3  ;;  %p415_p9 = scmp.lt.s32.totalorder %s1836_s28, 3 }
  0x13   : > { %s1964_s17 = scalar_select %p317_p7, %s1824_s11, %s319_s13  }
  0x14   : > { %p416_p10 = pnand %p1601_p6, %p415_p9 }
  0x15   : > { %2355 = sst [smem:[#allocation16_spill]] %s1964_s17  ;;  %s2348_s24 = sand.u32 (!%p416_p10), 1, %s1820_s10  }
  0x16   : > { %419 = sbr.rel (%p416_p10) target bundleno = 990 (0x3de), region = 64  ;;  %p476_p11 = scmp.lt.s32.totalorder (!%p416_p10), %s1828_s26, 1 }
  0x17   : > { %s1985_s18 = sshll.u32 (!%p416_p10), %s2348_s24, 3  ;;  %s2356_s1 = sld [smem:[#allocation17_spill]] (!%p416_p10) }
  0x18   : > { %s2159_s30 = sld [smem:[#allocation9 + %s1828_s26]] (!%p416_p10) }
  0x1b   : > { %v522_v0 = vld [vmem:[%s2340_s6 + $0x58] sm:$0xff]  ;;  %v521_v2 = vld [vmem:[%s2340_s6 + $0x50] sm:$0xff]  ;;  %v520_v4 = vld [vmem:[%s2340_s6 + $0x48] sm:$0xff]  ;;  %s2000_s13 = scalar_select %p476_p11, %s1828_s26, 1  ;;  %vm575_vm0 = vcmask 261120   ;;  %vm881_vm1 = vcmask 7168  }
  0x1c   : > { %v526_v1 = vld [vmem:[%s2340_s6 + $0x78] sm:$0xff]  ;;  %631 = vmatpush.msra.mxu2 %v522_v0  ;;  %v525_v3 = vld [vmem:[%s2340_s6 + $0x70] sm:$0xff]  ;;  %v524_v5 = vld [vmem:[%s2340_s6 + $0x68] sm:$0xff]  ;;  %v1839_v50 = vmov -inf   ;;  %v1840_v51 = vmov 0.0   ;;  %vm741_vm2 = vcmask 64512  }
  0x1d   : > { %651 = vmatpush.msra.mxu3 %v526_v1  ;;  %v514_v6 = vld [vmem:[%s2340_s6 + $0x18] sm:$0xff]  ;;  %v519_v8 = vld [vmem:[%s2340_s6 + $0x40] sm:$0xff]  ;;  %v513_v10 = vld [vmem:[%s2340_s6 + $0x10] sm:$0xff]  ;;  %s1603_s23 = sshll.u32 %s2000_s13, 1  ;;  %s1604_s0 = sshll.u32 %s2000_s13, 3  ;;  %882 = vst.msk [vmem:[#allocation5] sm:$0xff] %vm881_vm1, %v1839_v50 }
  0x1e   : > { %v518_v7 = vld [vmem:[%s2340_s6 + $0x38] sm:$0xff]  ;;  %632 = vmatpush.msra.mxu2 %v521_v2  ;;  %591 = vmatpush.msra.mxu0 %v514_v6  ;;  %v523_v9 = vld [vmem:[%s2340_s6 + $0x60] sm:$0xff]  ;;  %v517_v11 = vld [vmem:[%s2340_s6 + $0x30] sm:$0xff]  ;;  %s2016_s27 = scalar_lea.vmem %s2356_s1, %s1603_s23  ;;  %s501_s20 = scalar_lea.vmem %s2337_s3, %s1604_s0  ;;  %883 = vst.msk [vmem:[#allocation5 + $0x8] sm:$0xff] %vm881_vm1, %v1839_v50 }
  0x1f   : > { %652 = vmatpush.msra.mxu3 %v525_v3  ;;  %611 = vmatpush.msra.mxu1 %v518_v7  ;;  %v538_v12 = vld [vmem:[%s2340_s6 + $0xd8] sm:$0xff]  ;;  %v2029_v14 = vld [vmem:[%s501_s20] sm:$0xff]  ;;  %v512_v15 = vld [vmem:[%s2340_s6 + $0x8] sm:$0xff]  ;;  %s492_s17 = scalar_lea.vmem %s2336_s2, %s1604_s0  ;;  %884 = vst.msk [vmem:[#allocation5 + $0x10] sm:$0xff] %vm881_vm1, %v1839_v50  ;;  %s475_s13 = scalar_lea.vmem [#allocation10], %s1985_s18 }
  0x20   : > { %633 = vmatpush.msra.mxu2 %v520_v4  ;;  %v542_v13 = vld [vmem:[%s2340_s6 + $0xf8] sm:$0xff]  ;;  %592 = vmatpush.msra.mxu0 %v513_v10  ;;  %v516_v16 = vld [vmem:[%s2340_s6 + $0x28] sm:$0xff]  ;;  %v537_v17 = vld [vmem:[%s2340_s6 + $0xd0] sm:$0xff]  ;;  %885 = vst.msk [vmem:[#allocation5 + $0x18] sm:$0xff] %vm881_vm1, %v1839_v50  ;;  %p1618_p12 = scmp.eq.s32.totalorder %s2159_s30, 0 }
  0x21   : > { %653 = vmatpush.msra.mxu3 %v524_v5  ;;  %612 = vmatpush.msra.mxu1 %v517_v11  ;;  %v541_v18 = vld [vmem:[%s2340_s6 + $0xf0] sm:$0xff]  ;;  %v511_v19 = vld [vmem:[%s2340_s6] sm:$0xff]  ;;  %v536_v21 = vld [vmem:[%s2340_s6 + $0xc8] sm:$0xff]  ;;  %886 = vst.msk [vmem:[#allocation6] sm:$0xff] %vm881_vm1, %v1840_v51 }
  0x22   : > { %634 = vmatpush.msra.mxu2 %v519_v8  ;;  %v515_v20 = vld [vmem:[%s2340_s6 + $0x20] sm:$0xff]  ;;  %593 = vmatpush.msra.mxu0 %v512_v15  ;;  %v540_v22 = vld [vmem:[%s2340_s6 + $0xe8] sm:$0xff]  ;;  %v530_v23 = vld [vmem:[%s2340_s6 + $0x98] sm:$0xff]  ;;  %887 = vst.msk [vmem:[#allocation6 + $0x8] sm:$0xff] %vm881_vm1, %v1840_v51 }
  0x23   : > { %654 = vmatpush.msra.mxu3 %v523_v9  ;;  %1608 = vmatmul.msk.f32.vlgmr.msra.gmra.mxu2 %vm575_vm0, %v2029_v14  ;;  %v534_v24 = vld [vmem:[%s2340_s6 + $0xb8] sm:$0xff]  ;;  %v535_v25 = vld [vmem:[%s2340_s6 + $0xc0] sm:$0xff]  ;;  %v529_v27 = vld [vmem:[%s2340_s6 + $0x90] sm:$0xff]  ;;  %888 = vst.msk [vmem:[#allocation6 + $0x10] sm:$0xff] %vm881_vm1, %v1840_v51 }
  0x24   : > { %1609 = vmatmul.msk.f32.vlgmr.msra.gmra.mxu3 %vm575_vm0, %v2029_v14  ;;  %711 = vmatpush.msrb.mxu2 %v538_v12  ;;  %v539_v26 = vld [vmem:[%s2340_s6 + $0xe0] sm:$0xff]  ;;  %v533_v28 = vld [vmem:[%s2340_s6 + $0xb0] sm:$0xff]  ;;  %v767_v29 = vld [vmem:[%s2338_s4 + $0x58] sm:$0xff]  ;;  %889 = vst.msk [vmem:[#allocation6 + $0x18] sm:$0xff] %vm881_vm1, %v1840_v51 }
  0x25   : > { %731 = vmatpush.msrb.mxu3 %v542_v13  ;;  %613 = vmatpush.msra.mxu1 %v516_v16  ;;  %v771_v30 = vld [vmem:[%s2338_s4 + $0x78] sm:$0xff]  ;;  %v528_v31 = vld [vmem:[%s2340_s6 + $0x88] sm:$0xff]  ;;  %v766_v33 = vld [vmem:[%s2338_s4 + $0x50] sm:$0xff]  ;;  %890 = vst.msk [vmem:[#allocation7] sm:$0xff] %vm741_vm2, %v1840_v51 }
  0x26   : > { %712 = vmatpush.msrb.mxu2 %v537_v17  ;;  %594 = vmatpush.msra.mxu0 %v511_v19  ;;  %v532_v32 = vld [vmem:[%s2340_s6 + $0xa8] sm:$0xff]  ;;  %v770_v34 = vld [vmem:[%s2338_s4 + $0x70] sm:$0xff]  ;;  %v527_v35 = vld [vmem:[%s2340_s6 + $0x80] sm:$0xff]  ;;  %891 = vst.msk [vmem:[#allocation7 + $0x8] sm:$0xff] %vm741_vm2, %v1840_v51 }
  0x27   : > { %732 = vmatpush.msrb.mxu3 %v541_v18  ;;  %614 = vmatpush.msra.mxu1 %v515_v20  ;;  %v531_v36 = vld [vmem:[%s2340_s6 + $0xa0] sm:$0xff]  ;;  %v765_v37 = vld [vmem:[%s2338_s4 + $0x48] sm:$0xff]  ;;  %v759_v39 = vld [vmem:[%s2338_s4 + $0x18] sm:$0xff]  ;;  %892 = vst.msk [vmem:[#allocation7 + $0x10] sm:$0xff] %vm741_vm2, %v1840_v51 }
  0x28   : > { %713 = vmatpush.msrb.mxu2 %v536_v21  ;;  %1606 = vmatmul.msk.f32.vlgmr.msra.gmra.mxu0 %vm575_vm0, %v2029_v14  ;;  %v769_v38 = vld [vmem:[%s2338_s4 + $0x68] sm:$0xff]  ;;  %v763_v40 = vld [vmem:[%s2338_s4 + $0x38] sm:$0xff]  ;;  %v764_v41 = vld [vmem:[%s2338_s4 + $0x40] sm:$0xff]  ;;  %893 = vst.msk [vmem:[#allocation7 + $0x18] sm:$0xff] %vm741_vm2, %v1840_v51 }
  0x29   : > { %733 = vmatpush.msrb.mxu3 %v540_v22  ;;  %1607 = vmatmul.msk.f32.vlgmr.msra.gmra.mxu1 %vm575_vm0, %v2029_v14  ;;  %v768_v42 = vld [vmem:[%s2338_s4 + $0x60] sm:$0xff]  ;;  %v758_v43 = vld [vmem:[%s2338_s4 + $0x10] sm:$0xff]  ;;  %v757_v46 = vld [vmem:[%s2338_s4 + $0x8] sm:$0xff] }
  0x2a   : > { %671 = vmatpush.msrb.mxu0 %v530_v23  ;;  %691 = vmatpush.msrb.mxu1 %v534_v24  ;;  %v762_v44 = vld [vmem:[%s2338_s4 + $0x30] sm:$0xff]  ;;  %v755_v45 = vld [vmem:[%s492_s17] sm:$0xff]  ;;  %v761_v47 = vld [vmem:[%s2338_s4 + $0x28] sm:$0xff] }
  0x2b   : > { %714 = vmatpush.msrb.mxu2 %v535_v25  ;;  %734 = vmatpush.msrb.mxu3 %v539_v26  ;;  %v756_v48 = vld [vmem:[%s2338_s4] sm:$0xff] }
  0x2c   : > { %672 = vmatpush.msrb.mxu0 %v529_v27  ;;  %692 = vmatpush.msrb.mxu1 %v533_v28  ;;  %v760_v49 = vld [vmem:[%s2338_s4 + $0x20] sm:$0xff] }
  0x2d   : > { %1612 = vmatmul.msk.f32.vlgmr.msrb.gmra.mxu2 %vm575_vm0, %v2029_v14  ;;  %1613 = vmatmul.msk.f32.vlgmr.msrb.gmra.mxu3 %vm575_vm0, %v2029_v14  ;;  %v1702_v52 = vld [vmem:[%s2341_s7] ss:$0 sm:$0xff]  ;;  %v1703_v53 = vld [vmem:[%s2341_s7 + $0x1] ss:$0 sm:$0xff]  ;;  %v1704_v54 = vld [vmem:[%s2341_s7 + $0x2] ss:$0 sm:$0xff] }
  0x2e   : > { %844 = vmatpush.msra.mxu2 %v767_v29  ;;  %864 = vmatpush.msra.mxu3 %v771_v30  ;;  %v1705_v55 = vld [vmem:[%s2341_s7 + $0x3] ss:$0 sm:$0xff]  ;;  %v1706_v0 = vld [vmem:[%s2341_s7 + $0x4] ss:$0 sm:$0xff]  ;;  %v1707_v1 = vld [vmem:[%s2341_s7 + $0x5] ss:$0 sm:$0xff] }
  0x2f   : > { %673 = vmatpush.msrb.mxu0 %v528_v31  ;;  %693 = vmatpush.msrb.mxu1 %v532_v32  ;;  %v1708_v2 = vld [vmem:[%s2341_s7 + $0x6] ss:$0 sm:$0xff]  ;;  %v1709_v3 = vld [vmem:[%s2341_s7 + $0x7] ss:$0 sm:$0xff]  ;;  %v1710_v12 = vld [vmem:[%s2339_s5] ss:$0 sm:$0xff] }
  0x30   : > { %845 = vmatpush.msra.mxu2 %v766_v33  ;;  %865 = vmatpush.msra.mxu3 %v770_v34  ;;  %v1711_v13 = vld [vmem:[%s2339_s5 + $0x1] ss:$0 sm:$0xff]  ;;  %v1713_v15 = vld [vmem:[%s2339_s5 + $0x3] ss:$0 sm:$0xff] }
  0x31   : > { %674 = vmatpush.msrb.mxu0 %v527_v35  ;;  %694 = vmatpush.msrb.mxu1 %v531_v36 }
  0x32   : > { %846 = vmatpush.msra.mxu2 %v765_v37  ;;  %866 = vmatpush.msra.mxu3 %v769_v38 }
  0x33   : > { %1610 = vmatmul.msk.f32.vlgmr.msrb.gmra.mxu0 %vm575_vm0, %v2029_v14  ;;  %1611 = vmatmul.msk.f32.vlgmr.msrb.gmra.mxu1 %vm575_vm0, %v2029_v14  ;;  %v1712_v14 = vld [vmem:[%s2339_s5 + $0x2] ss:$0 sm:$0xff] }
  0x34   : > { %804 = vmatpush.msra.mxu0 %v759_v39  ;;  %824 = vmatpush.msra.mxu1 %v763_v40 }
  0x35   : > { %847 = vmatpush.msra.mxu2 %v764_v41  ;;  %867 = vmatpush.msra.mxu3 %v768_v42 }
  0x36   : > { %805 = vmatpush.msra.mxu0 %v758_v43  ;;  %825 = vmatpush.msra.mxu1 %v762_v44 }
  0x37   : > { %1616 = vmatmul.msk.f32.vlgmr.msra.gmra.mxu2 %vm575_vm0, %v755_v45  ;;  %1617 = vmatmul.msk.f32.vlgmr.msra.gmra.mxu3 %vm575_vm0, %v755_v45 }
  0x38   : > { %806 = vmatpush.msra.mxu0 %v757_v46  ;;  %826 = vmatpush.msra.mxu1 %v761_v47 }
  0x3a   : > { %807 = vmatpush.msra.mxu0 %v756_v48  ;;  %827 = vmatpush.msra.mxu1 %v760_v49 }
  0x3b   : > { %1614 = vmatmul.msk.f32.vlgmr.msra.gmra.mxu0 %vm575_vm0, %v755_v45  ;;  %1615 = vmatmul.msk.f32.vlgmr.msra.gmra.mxu1 %vm575_vm0, %v755_v45 }
  0xa5   : > { %v596_v56 = vpop.f32.mrf.mxu0 }
  0xa6   : > { %v616_v57 = vpop.f32.mrf.mxu1  ;;  %v597_v58 = vadd.f32 %v1702_v52, %v596_v56  ;;  %v636_v60 = vpop.f32.mrf.mxu2 }
  0xa7   : > { %v617_v59 = vadd.f32 %v1703_v53, %v616_v57  ;;  %v656_v61 = vpop.f32.mrf.mxu3  ;;  %v637_v62 = vadd.f32 %v1704_v54, %v636_v60 }
  0xa8   : > { %v657_v63 = vadd.f32 %v1705_v55, %v656_v61  ;;  %742 = vst.msk [vmem:[#allocation2] sm:$0xff] %vm741_vm2, %v597_v58 }
  0xa9   : > { %743 = vst.msk [vmem:[#allocation2 + $0x8] sm:$0xff] %vm741_vm2, %v617_v59 }
  0xaa   : > { %744 = vst.msk [vmem:[#allocation2 + $0x10] sm:$0xff] %vm741_vm2, %v637_v62 }
  0xab   : > { %745 = vst.msk [vmem:[#allocation2 + $0x18] sm:$0xff] %vm741_vm2, %v657_v63 }
  0xb0   : > { %v676_v4 = vpop.f32.mrf.mxu0  ;;  %v696_v5 = vpop.f32.mrf.mxu1 }
  0xb1   : > { %v677_v6 = vadd.f32 %v1706_v0, %v676_v4  ;;  %v697_v7 = vadd.f32 %v1707_v1, %v696_v5  ;;  %v716_v8 = vpop.f32.mrf.mxu2  ;;  %v736_v9 = vpop.f32.mrf.mxu3 }
  0xb2   : > { %v717_v10 = vadd.f32 %v1708_v2, %v716_v8  ;;  %v737_v11 = vadd.f32 %v1709_v3, %v736_v9 }
  0xb3   : > { %747 = vst.msk [vmem:[#allocation3] sm:$0xff] %vm741_vm2, %v677_v6 }
  0xb4   : > { %748 = vst.msk [vmem:[#allocation3 + $0x8] sm:$0xff] %vm741_vm2, %v697_v7 }
  0xb5   : > { %749 = vst.msk [vmem:[#allocation3 + $0x10] sm:$0xff] %vm741_vm2, %v717_v10 }
  0xb6   : > { %750 = vst.msk [vmem:[#allocation3 + $0x18] sm:$0xff] %vm741_vm2, %v737_v11 }
  0xb8   : > { %v809_v16 = vpop.f32.mrf.mxu0  ;;  %v829_v17 = vpop.f32.mrf.mxu1 }
  0xb9   : > { %v810_v18 = vadd.f32 %v1710_v12, %v809_v16  ;;  %v830_v19 = vadd.f32 %v1711_v13, %v829_v17 }
  0xba   : > { %v849_v20 = vpop.f32.mrf.mxu2  ;;  %v869_v21 = vpop.f32.mrf.mxu3 }
  0xbb   : > { %v872_v22 = vmul.f32 0.35355338, %v810_v18  ;;  %v873_v23 = vmul.f32 0.35355338, %v830_v19  ;;  %v850_v24 = vadd.f32 %v1712_v14, %v849_v20  ;;  %v870_v25 = vadd.f32 %v1713_v15, %v869_v21 }
  0xbc   : > { %900 = sbr.rel (%p1618_p12) target bundleno = 706 (0x2c2), region = 76 }
  0xbd   : > { %877 = vst.msk [vmem:[#allocation4] sm:$0xff] %vm741_vm2, %v872_v22  ;;  %v874_v26 = vmul.f32 0.35355338, %v850_v24  ;;  %v875_v27 = vmul.f32 0.35355338, %v870_v25 }
  0xbe   : > { %878 = vst.msk [vmem:[#allocation4 + $0x8] sm:$0xff] %vm741_vm2, %v873_v23 }
  0xbf   : > { %879 = vst.msk [vmem:[#allocation4 + $0x10] sm:$0xff] %vm741_vm2, %v874_v26 }
  0xc0   : > { %880 = vst.msk [vmem:[#allocation4 + $0x18] sm:$0xff] %vm741_vm2, %v875_v27 }
  0xc1   : > { %v903_v28 = vld [vmem:[#allocation2] sm:$0xff]  ;;  %v905_v29 = vld [vmem:[#allocation2 + $0x10] sm:$0xff]  ;;  %v904_v32 = vld [vmem:[#allocation2 + $0x8] sm:$0xff]  ;;  %v1841_v36 = vmov 0  }
  0xc2   : > { %1619 = vmatpush.xpose.msk.msra.mxu0 %vm741_vm2, %v903_v28  ;;  %1623 = vmatpush.xpose.msk.msra.mxu2 %vm741_vm2, %v905_v29  ;;  %v906_v33 = vld [vmem:[#allocation2 + $0x18] sm:$0xff]  ;;  %v1021_v37 = vld [vmem:[%s2016_s27] sm:$0x3]  ;;  %v1034_v56 = vld [vmem:[#allocation5 + $0x10] sm:$0xff] }
  0xc3   : > { %1621 = vmatpush.xpose.msk.msra.mxu1 %vm741_vm2, %v904_v32  ;;  %1625 = vmatpush.xpose.msk.msra.mxu3 %vm741_vm2, %v906_v33  ;;  %vm1022_vm3 = vnez %v1021_v37  ;;  %v1032_v52 = vld [vmem:[#allocation5] sm:$0xff]  ;;  %v1033_v58 = vld [vmem:[#allocation5 + $0x8] sm:$0xff]  ;;  %v1035_v2 = vld [vmem:[#allocation5 + $0x18] sm:$0xff] }
  0xc4   : > { %v912_v30 = vld [vmem:[#allocation4] sm:$0xff]  ;;  %1715 = vset.pattern.permute.xlu0 %v1841_v36  ;;  %1714 = vset.pattern.permute.xlu2 %v1841_v36  ;;  %v1023_v38 = vsel %vm1022_vm3, 16843009, %v1841_v36  ;;  %v910_v12 = vld [vmem:[#allocation3 + $0x10] sm:$0xff]  ;;  %v911_v13 = vld [vmem:[#allocation3 + $0x18] sm:$0xff] }
  0xc5   : > { %v913_v34 = vld [vmem:[#allocation4 + $0x8] sm:$0xff]  ;;  %1620 = vmatmul.msk.f32.vlgmr.msra.gmra.mxu0 %vm741_vm2, %v912_v30  ;;  %1716 = vset.pattern.permute.xlu1 %v1841_v36  ;;  %v1024_v39 = vunpack.c.0.s8 %v1023_v38  ;;  %v908_v14 = vld [vmem:[#allocation3] sm:$0xff] }
  0xc6   : > { %v914_v31 = vld [vmem:[#allocation4 + $0x10] sm:$0xff]  ;;  %1622 = vmatmul.msk.f32.vlgmr.msra.gmra.mxu1 %vm741_vm2, %v913_v34  ;;  %1217 = vmatpush.msrb.mxu2 %v910_v12  ;;  %v909_v15 = vld [vmem:[#allocation3 + $0x8] sm:$0xff] }
  0xc7   : > { %v915_v35 = vld [vmem:[#allocation4 + $0x18] sm:$0xff]  ;;  %1624 = vmatmul.msk.f32.vlgmr.msra.gmra.mxu2 %vm741_vm2, %v914_v31  ;;  %vm1025_vm4 = vcmp.ne.s32.totalorder %v1024_v39, 0  ;;  %1240 = vmatpush.msrb.mxu3 %v911_v13  ;;  %v1098_v39 = vld [vmem:[#allocation6 + $0x10] sm:$0xff] }
  0xc8   : > { %1626 = vmatmul.msk.f32.vlgmr.msra.gmra.mxu3 %vm741_vm2, %v915_v35  ;;  %1171 = vmatpush.msrb.mxu0 %v908_v14 }
  0xc9   : > { %1194 = vmatpush.msrb.mxu1 %v909_v15 }
 0x142   : > { %v940_v40 = vpop.f32.mrf.mxu0 }
 0x143   : > { %v2232_v41 = vsel %vm1025_vm4, %v940_v40, -1e+09  ;;  %v966_v43 = vpop.f32.mrf.mxu1 }
 0x144   : > { %v1036_v42 = vsel %vm741_vm2, %v2232_v41, -inf  ;;  %v2236_v44 = vsel %vm1025_vm4, %v966_v43, -1e+09 }
 0x145   : > { %1037 = vmax.xlane.f32.xlu1 %v1036_v42  ;;  %v1039_v48 = vsel %vm741_vm2, %v2236_v44, -inf }
 0x14a   : > { %v992_v45 = vpop.f32.mrf.mxu2 }
 0x14b   : > { %v1030_v46 = vsel %vm1025_vm4, %v992_v45, -1e+09  ;;  %v1018_v49 = vpop.f32.mrf.mxu3 }
 0x14c   : > { %v1042_v47 = vsel %vm741_vm2, %v1030_v46, -inf  ;;  %v1031_v50 = vsel %vm1025_vm4, %v1018_v49, -1e+09 }
 0x14d   : > { %1043 = vmax.xlane.f32.xlu0 %v1042_v47  ;;  %1040 = vmax.xlane.f32.xlu1 %v1039_v48  ;;  %v1045_v51 = vsel %vm741_vm2, %v1031_v50, -inf  ;;  %v1127_v48 = vld [vmem:[#allocation7 + $0x10] sm:$0xff] }
 0x155   : > { %1046 = vmax.xlane.f32.xlu0 %v1045_v51 }
 0x1b8   : > { %v1038_v53 = vpop.xlane.xlu1 %1037 }
 0x1b9   : > { %v1048_v54 = vmax.f32 %v1032_v52, %v1038_v53 }
 0x1bb   : > { %1253 = vst.msk [vmem:[#allocation5] sm:$0xff] %vm881_vm1, %v1048_v54  ;;  %1066 = vperm.xlu0 %1715, %v1048_v54   ;;  %v1052_v55 = vsub.f32 %v1032_v52, %v1048_v54 }
 0x1bd   : > { %v1056_v60 = vmul.f32 1.442695, %v1052_v55  ;;  %v1128_v55 = vld [vmem:[#allocation7 + $0x18] sm:$0xff] }
 0x1bf   : > { %1717 = vpow2.f32 %v1056_v60 }
 0x1c0   : > { %v1044_v57 = vpop.xlane.xlu0 %1043  ;;  %v1041_v61 = vpop.xlane.xlu1 %1040 }
 0x1c1   : > { %v1050_v59 = vmax.f32 %v1034_v56, %v1044_v57  ;;  %v1049_v63 = vmax.f32 %v1033_v58, %v1041_v61 }
 0x1c3   : > { %v1054_v62 = vsub.f32 %v1034_v56, %v1050_v59  ;;  %1255 = vst.msk [vmem:[#allocation5 + $0x10] sm:$0xff] %vm881_vm1, %v1050_v59  ;;  %1076 = vperm.xlu2 %1714, %v1050_v59   ;;  %1071 = vperm.xlu1 %1716, %v1049_v63   ;;  %v1053_v1 = vsub.f32 %v1033_v58, %v1049_v63  ;;  %v1097_v58 = vld [vmem:[#allocation6 + $0x8] sm:$0xff]  ;;  %v1125_v59 = vld [vmem:[#allocation7] sm:$0xff] }
 0x1c4   : > { %1254 = vst.msk [vmem:[#allocation5 + $0x8] sm:$0xff] %vm881_vm1, %v1049_v63 }
 0x1c5   : > { %v1060_v0 = vmul.f32 1.442695, %v1054_v62  ;;  %v1058_v5 = vmul.f32 1.442695, %v1053_v1  ;;  %v2246_v6 = vpop.eup %1717 }
 0x1c7   : > { %1719 = vpow2.f32 %v1060_v0 }
 0x1c8   : > { %v1047_v3 = vpop.xlane.xlu0 %1046  ;;  %1721 = vpow2.f32 %v1058_v5 }
 0x1c9   : > { %v1051_v4 = vmax.f32 %v1035_v2, %v1047_v3 }
 0x1cb   : > { %1256 = vst.msk [vmem:[#allocation5 + $0x18] sm:$0xff] %vm881_vm1, %v1051_v4  ;;  %1081 = vperm.xlu2 %1714, %v1051_v4   ;;  %v1055_v7 = vsub.f32 %v1035_v2, %v1051_v4  ;;  %1131 = vperm.xlu1 %1716, %v2246_v6   ;;  %v1126_v4 = vld [vmem:[#allocation7 + $0x8] sm:$0xff] }
 0x1cd   : > { %v1720_v8 = vpop.eup %1719  ;;  %v1062_v9 = vmul.f32 1.442695, %v1055_v7 }
 0x1ce   : > { %1141 = vperm.xlu0 %1715, %v1720_v8   ;;  %v2249_v10 = vpop.eup %1721  ;;  %v1102_v40 = vmul.f32 %v1720_v8, %v1098_v39 }
 0x1cf   : > { %1723 = vpow2.f32 %v1062_v9  ;;  %v1101_v62 = vmul.f32 %v2249_v10, %v1097_v58 }
 0x1d3   : > { %1136 = vperm.xlu1 %1716, %v2249_v10  }
 0x1d5   : > { %v1724_v11 = vpop.eup %1723 }
 0x1db   : > { %1146 = vperm.xlu1 %1716, %v1724_v11  }
 0x21d   : > { %v1077_v16 = vpop.permute.xlu2 %1076 }
 0x21e   : > { %v1086_v17 = vsub.f32 %v1030_v46, %v1077_v16 }
 0x220   : > { %v1092_v18 = vmul.f32 1.442695, %v1086_v17 }
 0x222   : > { %1725 = vpow2.f32 %v1092_v18 }
 0x225   : > { %v1082_v19 = vpop.permute.xlu2 %1081 }
 0x226   : > { %v1087_v20 = vsub.f32 %v1031_v50, %v1082_v19  ;;  %v1096_v50 = vld [vmem:[#allocation6] sm:$0xff] }
 0x227   : > { %v1100_v53 = vmul.f32 %v2246_v6, %v1096_v50 }
 0x228   : > { %v1726_v21 = vpop.eup %1725  ;;  %v1094_v22 = vmul.f32 1.442695, %v1087_v20 }
 0x229   : > { %1629 = vmatmul.msk.f32.vlgmr.msrb.gmra.mxu2 %vm741_vm2, %v1726_v21  ;;  %v1110_v23 = vsel %vm741_vm2, %v1726_v21, 0.0 }
 0x22a   : > { %1727 = vpow2.f32 %v1094_v22  ;;  %1111 = vadd.xlane.f32.xlu0 %v1110_v23 }
 0x22d   : > { %v1067_v24 = vpop.permute.xlu0 %1066 }
 0x22e   : > { %v1084_v26 = vsub.f32 %v2232_v41, %v1067_v24 }
 0x230   : > { %v1728_v25 = vpop.eup %1727  ;;  %v1088_v28 = vmul.f32 1.442695, %v1084_v26 }
 0x231   : > { %1630 = vmatmul.msk.f32.vlgmr.msrb.gmra.mxu3 %vm741_vm2, %v1728_v25  ;;  %v1113_v27 = vsel %vm741_vm2, %v1728_v25, 0.0 }
 0x232   : > { %1114 = vadd.xlane.f32.xlu1 %v1113_v27  ;;  %1729 = vpow2.f32 %v1088_v28 }
 0x235   : > { %v1072_v29 = vpop.permute.xlu1 %1071 }
 0x236   : > { %v1085_v30 = vsub.f32 %v2236_v44, %v1072_v29  ;;  %v1099_v44 = vld [vmem:[#allocation6 + $0x18] sm:$0xff] }
 0x237   : > { %v1103_v45 = vmul.f32 %v1724_v11, %v1099_v44 }
 0x238   : > { %v1730_v31 = vpop.eup %1729  ;;  %v1090_v32 = vmul.f32 1.442695, %v1085_v30 }
 0x239   : > { %1627 = vmatmul.msk.f32.vlgmr.msrb.gmra.mxu0 %vm741_vm2, %v1730_v31  ;;  %v1104_v33 = vsel %vm741_vm2, %v1730_v31, 0.0 }
 0x23a   : > { %1731 = vpow2.f32 %v1090_v32  ;;  %1105 = vadd.xlane.f32.xlu2 %v1104_v33 }
 0x23d   : > { %v1132_v36 = vpop.permute.xlu1 %1131 }
 0x23e   : > { %v1149_v63 = vmul.f32 %v1132_v36, %v1125_v59 }
 0x240   : > { %v1732_v34 = vpop.eup %1731  ;;  %v1142_v38 = vpop.permute.xlu0 %1141 }
 0x241   : > { %1628 = vmatmul.msk.f32.vlgmr.msrb.gmra.mxu1 %vm741_vm2, %v1732_v34  ;;  %v1107_v35 = vsel %vm741_vm2, %v1732_v34, 0.0  ;;  %v1151_v49 = vmul.f32 %v1142_v38, %v1127_v48 }
 0x242   : > { %1108 = vadd.xlane.f32.xlu2 %v1107_v35 }
 0x245   : > { %v1137_v37 = vpop.permute.xlu1 %1136 }
 0x246   : > { %v1150_v5 = vmul.f32 %v1137_v37, %v1126_v4 }
 0x24d   : > { %v1147_v41 = vpop.permute.xlu1 %1146 }
 0x24e   : > { %v1152_v57 = vmul.f32 %v1147_v41, %v1128_v55 }
 0x29d   : > { %v1112_v42 = vpop.xlane.xlu0 %1111 }
 0x29e   : > { %v1118_v43 = vadd.f32 %v1112_v42, %v1102_v40 }
 0x2a0   : > { %1123 = vst.msk [vmem:[#allocation6 + $0x10] sm:$0xff] %vm881_vm1, %v1118_v43 }
 0x2a5   : > { %v1115_v46 = vpop.xlane.xlu1 %1114 }
 0x2a6   : > { %v1119_v47 = vadd.f32 %v1115_v46, %v1103_v45 }
 0x2a8   : > { %1124 = vst.msk [vmem:[#allocation6 + $0x18] sm:$0xff] %vm881_vm1, %v1119_v47 }
 0x2ac   : > { %v1219_v51 = vpop.f32.mrf.mxu2 }
 0x2ad   : > { %v1247_v52 = vadd.f32 %v1219_v51, %v1151_v49  ;;  %v1106_v54 = vpop.xlane.xlu2 %1105 }
 0x2ae   : > { %v1116_v56 = vadd.f32 %v1106_v54, %v1100_v53 }
 0x2af   : > { %1251 = vst.msk [vmem:[#allocation7 + $0x10] sm:$0xff] %vm741_vm2, %v1247_v52 }
 0x2b0   : > { %1121 = vst.msk [vmem:[#allocation6] sm:$0xff] %vm881_vm1, %v1116_v56 }
 0x2b4   : > { %v1242_v60 = vpop.f32.mrf.mxu3 }
 0x2b5   : > { %v1248_v61 = vadd.f32 %v1242_v60, %v1152_v57  ;;  %v1109_v0 = vpop.xlane.xlu2 %1108 }
 0x2b6   : > { %v1117_v1 = vadd.f32 %v1109_v0, %v1101_v62  ;;  %v1173_v2 = vpop.f32.mrf.mxu0 }
 0x2b7   : > { %1252 = vst.msk [vmem:[#allocation7 + $0x18] sm:$0xff] %vm741_vm2, %v1248_v61  ;;  %v1245_v3 = vadd.f32 %v1173_v2, %v1149_v63 }
 0x2b8   : > { %1122 = vst.msk [vmem:[#allocation6 + $0x8] sm:$0xff] %vm881_vm1, %v1117_v1 }
 0x2b9   : > { %1249 = vst.msk [vmem:[#allocation7] sm:$0xff] %vm741_vm2, %v1245_v3 }
 0x2be   : > { %v1196_v6 = vpop.f32.mrf.mxu1 }
 0x2bf   : > { %v1246_v7 = vadd.f32 %v1196_v6, %v1150_v5 }
 0x2c1   : > { %1250 = vst.msk [vmem:[#allocation7 + $0x8] sm:$0xff] %vm741_vm2, %v1246_v7 }
 0x2c2 PF: > { %v1262_v8 = vld [vmem:[#allocation6 + $0x10] sm:$0xff]  ;;  %v1260_v9 = vld [vmem:[#allocation6] sm:$0xff]  ;;  %v1842_v10 = vmov 0   ;;  %v1263_v13 = vld [vmem:[#allocation6 + $0x18] sm:$0xff]  ;;  %s1639_s29 = sshll.u32 %s1828_s26, 3  ;;  %s1479_s30 = sshll.u32 %s475_s13, 4  ;;  %s1480_s30 = int_to_ptr.vmem [resolvable:$true] %s1479_s30 }
 0x2c3   : > { %1734 = vset.pattern.permute.xlu1 %v1842_v10  ;;  %1733 = vset.pattern.permute.xlu0 %v1842_v10  ;;  %vm1266_vm5 = vcmp.gt.f32.partialorder %v1262_v8, 0.0  ;;  %vm1264_vm6 = vcmp.gt.f32.partialorder %v1260_v9, 0.0  ;;  %v1261_v14 = vld [vmem:[#allocation6 + $0x8] sm:$0xff]  ;;  %vm1267_vm7 = vcmp.gt.f32.partialorder %v1263_v13, 0.0  ;;  %v1356_v17 = vld [vmem:[%s2342_s8] sm:$0xff]  ;;  %v1634_v18 = vld [vmem:[%s2342_s8 + $0x10] sm:$0xff]  ;;  %s1477_s17 = scalar_lea.hbm %s2346_s12, %s1639_s29 }
 0x2c4   : > { %v1270_v11 = vsel %vm1266_vm5, %v1262_v8, 1.0  ;;  %v1268_v12 = vsel %vm1264_vm6, %v1260_v9, 1.0  ;;  %vm1265_vm8 = vcmp.gt.f32.partialorder %v1261_v14, 0.0  ;;  %v1271_v15 = vsel %vm1267_vm7, %v1263_v13, 1.0  ;;  %1401 = vmatpush.msra.mxu1 %v1356_v17  ;;  %1426 = vmatpush.msra.mxu2 %v1634_v18  ;;  %v1631_v19 = vld [vmem:[%s2342_s8 + $0x8] sm:$0xff]  ;;  %v1636_v20 = vld [vmem:[%s2342_s8 + $0x18] sm:$0xff] }
 0x2c5   : > { %1288 = vperm.xlu0 %1733, %v1270_v11   ;;  %1278 = vperm.xlu1 %1734, %v1268_v12   ;;  %v1269_v16 = vsel %vm1265_vm8, %v1261_v14, 1.0  ;;  %v1274_v40 = vld [vmem:[#allocation7 + $0x10] sm:$0xff]  ;;  %v1272_v44 = vld [vmem:[#allocation7] sm:$0xff]  ;;  %v1275_v0 = vld [vmem:[#allocation7 + $0x18] sm:$0xff]  ;;  %s1481_s21 = sshll.u32 %s1477_s17, 4  ;;  %s2357_s26 = sand.u32 1, %s1820_s10   ;;  %s1482_s21 = int_to_ptr.hbm [resolvable:$true] %s1481_s21 }
 0x2c6   : > { %1378 = vmatpush.msra.mxu0 %v1631_v19  ;;  %1452 = vmatpush.msra.mxu3 %v1636_v20  ;;  %v1735_v14 = vld [vmem:[%s2343_s9] ss:$0 sm:$0xff]  ;;  %s1466_s0 = scalar_lea.sflag [#allocation11], %s2357_s26  ;;  %s1770_s22 = sshra.s32 %s1482_s21, 4  ;;  %s1771_s22 = int_to_ptr.hbm [resolvable:$true] %s1770_s22 }
 0x2c7   : > { %s1772_s1 = scalar_lea.hbm %s1771_s22, 8  ;;  %s1776_s29 = scalar_lea.hbm %s2346_s12, 16 }
 0x2c8   : > { %v1273_v2 = vld [vmem:[#allocation7 + $0x8] sm:$0xff]  ;;  %p1773_p13 = scmp.ne.s32.totalorder %s1771_s22, %s1772_s1  ;;  %p1777_p2 = scmp.lt.s32.totalorder %s1771_s22, %s2346_s12 }
 0x2c9   : > { %p1778_p3 = scmp.lt.s32.totalorder %s1776_s29, %s1772_s1 }
 0x2ca   : > { %p1774_p0 = pnand %p1773_p13, %p1951_p4 }
 0x2cb   : > { %p1779_p5 = por %p1778_p3, %p1777_p2 }
 0x2cc   : > { %p1775_p1 = pneg %p1774_p0 }
 0x2cd   : > { %1293 = vperm.xlu0 %1733, %v1271_v15   ;;  %1283 = vperm.xlu1 %1734, %v1269_v16  }
 0x2ce   : > { %p1780_p6 = pnand %p1779_p5, %p1775_p1 }
 0x337   : > { %v1289_v21 = vpop.permute.xlu0 %1288  ;;  %v1279_v22 = vpop.permute.xlu1 %1278 }
 0x338   : > { %1736 = vrcp.f32 %v1289_v21  ;;  %v1337_v31 = vand.u32 2147483648, %v1289_v21  ;;  %v1307_v33 = vand.u32 2147483648, %v1279_v22  ;;  %v1335_v34 = vand.u32 2147483647, %v1289_v21 }
 0x339   : > { %1738 = vrcp.f32 %v1279_v22  ;;  %v1305_v36 = vand.u32 2147483647, %v1279_v22  ;;  %vm1331_vm11 = vweird.f32 %v1289_v21  ;;  %vm1301_vm12 = vweird.f32 %v1279_v22 }
 0x33a   : > { %v1338_v41 = vor.u32 1.1754944e-38, %v1337_v31  ;;  %v1308_v45 = vor.u32 1.1754944e-38, %v1307_v33  ;;  %vm1336_vm15 = vcmp.eq.f32.partialorder %v1335_v34, 8.507059e+37 }
 0x33b   : > { %vm1306_vm1 = vcmp.eq.f32.partialorder %v1305_v36, 8.507059e+37 }
 0x33e   : > { %v1737_v23 = vpop.eup %1736 }
 0x33f   : > { %v1739_v24 = vpop.eup %1738  ;;  %v1327_v25 = vmul.f32 %v1737_v23, %v1289_v21  ;;  %v1294_v26 = vpop.permute.xlu0 %1293  ;;  %vm1332_vm9 = vweird.f32 %v1737_v23 }
 0x340   : > { %v1284_v27 = vpop.permute.xlu1 %1283  ;;  %v1297_v28 = vmul.f32 %v1739_v24, %v1279_v22  ;;  %1740 = vrcp.f32 %v1294_v26  ;;  %vm1302_vm10 = vweird.f32 %v1739_v24  ;;  %vm1333_vm13 = vmor %vm1331_vm11, %vm1332_vm9  ;;  %v1352_v53 = vand.u32 2147483648, %v1294_v26 }
 0x341   : > { %v1328_v29 = vsub.f32 1.0, %v1327_v25  ;;  %1742 = vrcp.f32 %v1284_v27  ;;  %vm1303_vm14 = vmor %vm1301_vm12, %vm1302_vm10  ;;  %v1322_v57 = vand.u32 2147483648, %v1284_v27  ;;  %v1350_v58 = vand.u32 2147483647, %v1294_v26 }
 0x342   : > { %v1298_v30 = vsub.f32 1.0, %v1297_v28  ;;  %v1320_v60 = vand.u32 2147483647, %v1284_v27  ;;  %vm1346_vm5 = vweird.f32 %v1294_v26  ;;  %v1353_v62 = vor.u32 1.1754944e-38, %v1352_v53 }
 0x343   : > { %v1329_v32 = vmul.f32 %v1737_v23, %v1328_v29  ;;  %vm1316_vm7 = vweird.f32 %v1284_v27  ;;  %v1323_v1 = vor.u32 1.1754944e-38, %v1322_v57  ;;  %vm1351_vm9 = vcmp.eq.f32.partialorder %v1350_v58, 8.507059e+37 }
 0x344   : > { %v1299_v35 = vmul.f32 %v1739_v24, %v1298_v30  ;;  %vm1321_vm10 = vcmp.eq.f32.partialorder %v1320_v60, 8.507059e+37 }
 0x345   : > { %v1330_v37 = vadd.f32 %v1737_v23, %v1329_v32 }
 0x346   : > { %v1741_v38 = vpop.eup %1740  ;;  %v1300_v39 = vadd.f32 %v1739_v24, %v1299_v35 }
 0x347   : > { %v1743_v42 = vpop.eup %1742  ;;  %v1342_v43 = vmul.f32 %v1741_v38, %v1294_v26  ;;  %v1334_v46 = vsel %vm1333_vm13, %v1737_v23, %v1330_v37  ;;  %vm1347_vm3 = vweird.f32 %v1741_v38 }
 0x348   : > { %v1312_v47 = vmul.f32 %v1743_v42, %v1284_v27  ;;  %v1304_v48 = vsel %vm1303_vm14, %v1739_v24, %v1300_v39  ;;  %v1339_v49 = vsel %vm1336_vm15, %v1338_v41, %v1334_v46  ;;  %vm1317_vm4 = vweird.f32 %v1743_v42  ;;  %vm1348_vm6 = vmor %vm1346_vm5, %vm1347_vm3 }
 0x349   : > { %v1343_v50 = vsub.f32 1.0, %v1342_v43  ;;  %v1309_v51 = vsel %vm1306_vm1, %v1308_v45, %v1304_v48  ;;  %v1340_v52 = vmul.f32 %v1339_v49, %v1274_v40  ;;  %vm1318_vm8 = vmor %vm1316_vm7, %vm1317_vm4 }
 0x34a   : > { %v1313_v54 = vsub.f32 1.0, %v1312_v47  ;;  %v1310_v55 = vmul.f32 %v1309_v51, %v1272_v44 }
 0x34b   : > { %v1344_v56 = vmul.f32 %v1741_v38, %v1343_v50  ;;  %1635 = vmatmul.msk.f32.vlgmr.msra.gmra.mxu2 %vm741_vm2, %v1340_v52 }
 0x34c   : > { %v1314_v59 = vmul.f32 %v1743_v42, %v1313_v54  ;;  %1633 = vmatmul.msk.f32.vlgmr.msra.gmra.mxu1 %vm741_vm2, %v1310_v55 }
 0x34d   : > { %v1345_v61 = vadd.f32 %v1741_v38, %v1344_v56 }
 0x34e   : > { %v1315_v63 = vadd.f32 %v1743_v42, %v1314_v59 }
 0x34f   : > { %v1349_v3 = vsel %vm1348_vm6, %v1741_v38, %v1345_v61 }
 0x350   : > { %v1319_v4 = vsel %vm1318_vm8, %v1743_v42, %v1315_v63  ;;  %v1354_v5 = vsel %vm1351_vm9, %v1353_v62, %v1349_v3 }
 0x351   : > { %v1324_v6 = vsel %vm1321_vm10, %v1323_v1, %v1319_v4  ;;  %v1355_v7 = vmul.f32 %v1354_v5, %v1275_v0 }
 0x352   : > { %v1325_v8 = vmul.f32 %v1324_v6, %v1273_v2 }
 0x353   : > { %1637 = vmatmul.msk.f32.vlgmr.msra.gmra.mxu3 %vm741_vm2, %v1355_v7 }
 0x354   : > { %1632 = vmatmul.msk.f32.vlgmr.msra.gmra.mxu0 %vm741_vm2, %v1325_v8 }
 0x3c9   : > { %v1403_v9 = vpop.f32.mrf.mxu1 }
 0x3ce   : > { %v1428_v12 = vpop.f32.mrf.mxu2 }
 0x3d1   : > { %v1380_v10 = vpop.f32.mrf.mxu0 }
 0x3d2   : > { %v1404_v11 = vadd.f32 %v1403_v9, %v1380_v10 }
 0x3d4   : > { %v1431_v13 = vadd.f32 %v1428_v12, %v1404_v11 }
 0x3d6   : > { %v1454_v15 = vpop.f32.mrf.mxu3 }
 0x3d7   : > { %v1457_v16 = vadd.f32 %v1454_v15, %v1431_v13 }
 0x3d9   : > { %v1462_v17 = vadd.f32 %v1735_v14, %v1457_v16 }
 0x3db   : > { %1464 = vst.msk [vmem:[%s475_s13] sm:$0xff] %vm575_vm0, %v1462_v17 }
 0x3dc   : > { %1783 = shalt.err (!%p1780_p6)
}
 0x3dd   : > { %1642 = dma.vmem_to_hbm [thread:$0]  (%p1951_p4), %s1480_s30, 128, %s1482_s21, %s1466_s0  }
 0x3de PF: > { %p1648_p7 = scmp.ge.s32.totalorder %s1836_s28, 2  ;;  %s1493_s18 = sand.u32 1, %s1816_s25  }
 0x3df   : > { %s1494_s13 = scalar_lea.sflag [#allocation11], %s1493_s18 }
 0x3e0   : > { %p1645_p9 = pnand %p1648_p7, %p1958_p8 }
 0x3e2   : > { %p1646_p10 = pneg %p1645_p9 }
 0x3e4   : > { %1811 = dma.done.wait (%p1646_p10), %s1494_s13, 128  }
 0x3e5   : > { %1813 = vsyncadd (%p1646_p10), %s1494_s13, 4294967168  ;;  %s33_s28 = sadd.s32 1, %s1836_s28   ;;  %s2358_s17 = sld [smem:[#allocation16_spill]] }
 0x3e6   : > { %p30_p11 = scmp.ge.s32.totalorder %s33_s28, 4   ;;  %s2359_s26 = sld [smem:[#allocation14_spill]] }
 0x3e7   : > { %s2360_s27 = sld [smem:[#allocation15_spill]]  ;;  %s2361_s25 = smov %s1820_s10 }
 0x3e8   : > { %s2362_s10 = smov %s1824_s11  ;;  %32 = sbr.rel (!%p30_p11) target bundleno = 10 (0xa), region = 128 }
 0x3eb   : > { %s2363_s11 = smov %s2358_s17 }
 0x3ed   :  { %1500 = vsyncpa [#allocation11], 1 }
 0x3ee   :  { %1502 = vsyncpa [#allocation11 + $0x1], 1 }

</bundles_post_ra>
